<compile_context>
chip_gen: v7x
topology: tpu7x:2x2x1
jax: 0.10.0
libtpu: 0.0.40
codegen_flags: <defaults>
</compile_context>

<pallas_src>
import functools

import jax
import jax.numpy as jnp
import numpy as np
from jax.experimental import pallas as pl
from jax.experimental.pallas import tpu as pltpu


def _round_up(x, m):
    return -(-x // m) * m


# ----------------------------------------------------------------------------
# Fused MLP kernel: the entire forward pass for one batch tile.
# refs = (x_ref, w0, b0, w1, b1, ..., w_{L-1}, b_{L-1}, o_ref)
# ----------------------------------------------------------------------------
def _fused_mlp_kernel(*refs, alpha, acts, use_bf16, f32_precision):
    x_ref = refs[0]
    o_ref = refs[-1]
    wb_refs = refs[1:-1]
    n_layers = len(wb_refs) // 2
    assert n_layers == len(acts)

    h = x_ref[...]                               # (TB, ninput) f32
    if use_bf16:
        h = h.astype(jnp.bfloat16)               # single cast; chain stays bf16
    for k in range(n_layers):
        w = wb_refs[2 * k][...]                  # (K, N)  bf16 or f32
        b = wb_refs[2 * k + 1][...]              # (1, N)  f32
        if use_bf16:
            y = jnp.dot(h, w, preferred_element_type=jnp.float32)
        else:
            y = jnp.dot(h, w, preferred_element_type=jnp.float32,
                        precision=f32_precision)
        y = y + b                                # f32 accumulator + f32 bias
        if acts[k]:
            # LeakyReLU(alpha), alpha > 0  ->  max(y, alpha*y): single vmax.
            y = jnp.maximum(y, alpha * y)
            h = y.astype(jnp.bfloat16) if use_bf16 else y
        else:
            h = y                                # final layer stays f32
    o_ref[...] = h.astype(o_ref.dtype)


# ----------------------------------------------------------------------------
# Wrapper: batch-tiled, weight-resident fused forward pass.
# ----------------------------------------------------------------------------
def mdn_forward_fused(layers, inp, *, out_width, batch_tile=2048, use_bf16=True,
                      f32_precision=jax.lax.Precision.HIGHEST):
    """layers: list of (W (K,N) f32, b (1,N) f32, activate) from
    build_fused_layers() (last layer lane-padded).  inp: (B, ninput) f32.
    out_width: true merged output width = 2*(ndeg+1).
    Returns (p1d, logerrp1d), each (B, ndeg+1) f32."""
    B, nin = inp.shape
    out_pad = int(layers[-1][0].shape[1])        # lane-padded output width (>=128)
    nout = out_width // 2

    # Batch tile: multiple of 16 (bf16 sublane packing) or 8 (f32).  For small
    # and medium batches target >= 2 grid steps so a v7x megacore splits the
    # "parallel" axis across both TensorCores.
    align = 16 if use_bf16 else 8
    if B > 2 * batch_tile:
        tb = batch_tile
    else:
        tb = max(align, _round_up(-(-B // 2), align))
    b_pad = _round_up(B, tb)
    x = inp if b_pad == B else jnp.pad(inp, ((0, b_pad - B), (0, 0)))
    grid = (b_pad // tb,)

    flat_args = [x]
    in_specs = [pl.BlockSpec((tb, nin), lambda i: (i, 0))]
    acts = []
    flops = 0
    param_bytes = 0
    for (w, b, act) in layers:
        w_in = w.astype(jnp.bfloat16) if use_bf16 else w
        flat_args += [w_in, b]
        # Weights / biases: full-array blocks, constant index maps -> stay
        # resident in VMEM across all batch-grid steps (no re-DMA).
        in_specs += [
            pl.BlockSpec(tuple(w_in.shape), lambda i: (0, 0)),
            pl.BlockSpec(tuple(b.shape), lambda i: (0, 0)),
        ]
        acts.append(bool(act))
        flops += 2 * b_pad * int(w.shape[0]) * int(w.shape[1])
        param_bytes += int(w_in.size) * w_in.dtype.itemsize + int(b.size) * 4

    io_bytes = b_pad * (nin + out_pad) * 4
    cost = pl.CostEstimate(flops=int(flops), transcendentals=0,
                           bytes_accessed=int(param_bytes + io_bytes))

    # Explicit VMEM budget (v5e's default scoped limit is only 16 MiB):
    # params (x2 double-buffer pessimism) + double-buffered I/O tiles +
    # activation headroom + slack.  Clamped to [32, 64] MiB (safe on all gens).
    vmem_need = (2 * param_bytes + 2 * tb * (nin + out_pad) * 4
                 + 6 * tb * 128 * 4 + (4 << 20))
    vmem_limit = int(min(64 << 20, max(32 << 20, vmem_need)))

    kernel = functools.partial(_fused_mlp_kernel, alpha=0.5, acts=tuple(acts),
                               use_bf16=use_bf16, f32_precision=f32_precision)
    out = pl.pallas_call(
        kernel,
        out_shape=jax.ShapeDtypeStruct((b_pad, out_pad), jnp.float32),
        grid=grid,
        in_specs=in_specs,
        out_specs=pl.BlockSpec((tb, out_pad), lambda i: (i, 0)),
        compiler_params=pltpu.CompilerParams(
            dimension_semantics=("parallel",),
            vmem_limit_bytes=vmem_limit),
        cost_estimate=cost,
    )(*flat_args)

    out = out[:B, :out_width]                    # drop batch pad + lane pad
    return out[:, :nout], out[:, nout:]


# ----------------------------------------------------------------------------
# Parameter construction (deterministic, PyTorch-Linear-style uniform init).
# Weights are stored (in_features, out_features) = PyTorch weight transposed.
# ----------------------------------------------------------------------------
def _init_linear(key, fan_in, fan_out):
    kw, kb = jax.random.split(key)
    bound = 1.0 / np.sqrt(fan_in)
    w = jax.random.uniform(kw, (fan_in, fan_out), jnp.float32, -bound, bound)
    b = jax.random.uniform(kb, (fan_out,), jnp.float32, -bound, bound)
    return w, b


def build_params(key, nhidden, ndeg, max_neurons=100, ninput=6):
    params = {}
    keys = jax.random.split(key, 1 + (nhidden - 1) + 4)
    ki = iter(keys)
    params["inputlay"] = _init_linear(next(ki), ninput, 10)
    sizes = np.linspace(10, max_neurons, nhidden)   # same int() truncation as torch module
    params["hiddenlay"] = [
        _init_linear(next(ki), int(sizes[k]), int(sizes[k + 1]))
        for k in range(nhidden - 1)
    ]
    params["means"] = [_init_linear(next(ki), max_neurons, 50),
                       _init_linear(next(ki), 50, ndeg + 1)]
    params["stds"] = [_init_linear(next(ki), max_neurons, 50),
                      _init_linear(next(ki), 50, ndeg + 1)]
    return params


def build_fused_layers(params):
    """Flatten the module into [(W, b(1,N), activate)], merging the two heads.
    The final merged output layer is zero-padded to a multiple of 128 lanes so
    the kernel's result stores are unmasked.  Returns (layers, out_width)."""
    layers = []
    w, b = params["inputlay"]
    layers.append((w, b.reshape(1, -1), True))
    for (w, b) in params["hiddenlay"]:
        layers.append((w, b.reshape(1, -1), True))

    (wm0, bm0), (wm1, bm1) = params["means"]
    (ws0, bs0), (ws1, bs1) = params["stds"]
    # Head first layers -> one (max_neurons, 100) matmul producing both
    # 50-wide intermediates side by side.
    w_h = jnp.concatenate([wm0, ws0], axis=1)
    b_h = jnp.concatenate([bm0, bs0], axis=0).reshape(1, -1)
    layers.append((w_h, b_h, True))
    # Head output layers -> one block-diagonal matmul, lane-padded to 128.
    k_m, n_m = wm1.shape
    k_s, n_s = ws1.shape
    out_width = n_m + n_s                        # 2 * (ndeg + 1)
    out_pad = max(128, _round_up(out_width, 128))
    w_o = jnp.zeros((k_m + k_s, out_pad), jnp.float32)
    w_o = w_o.at[:k_m, :n_m].set(wm1)
    w_o = w_o.at[k_m:, n_m:out_width].set(ws1)
    b_o = jnp.zeros((1, out_pad), jnp.float32)
    b_o = b_o.at[0, :out_width].set(jnp.concatenate([bm1, bs1], axis=0))
    layers.append((w_o, b_o, False))
    return layers, out_width


# ----------------------------------------------------------------------------
# Pure-JAX reference (unfused, per-layer) for correctness checking.
# ----------------------------------------------------------------------------
def _leaky(x, a=0.5):
    return jnp.where(x >= 0, x, a * x)


def _mm(x, w):
    return jnp.dot(x, w, precision=jax.lax.Precision.HIGHEST)


def reference_forward(params, inp):
    w, b = params["inputlay"]
    x = _leaky(_mm(inp, w) + b)
    for (w, b) in params["hiddenlay"]:
        x = _leaky(_mm(x, w) + b)
    (w0, b0), (w1, b1) = params["means"]
    p1d = _mm(_leaky(_mm(x, w0) + b0), w1) + b1
    (w0, b0), (w1, b1) = params["stds"]
    logerrp1d = _mm(_leaky(_mm(x, w0) + b0), w1) + b1
    return p1d, logerrp1d


if __name__ == "__main__":
    nhidden = 4
    ndeg = 4
    max_neurons = 100
    ninput = 6
    batch = 8

    key = jax.random.PRNGKey(0)
    kparams, kinp, kbig = jax.random.split(key, 3)

    params = build_params(kparams, nhidden, ndeg, max_neurons, ninput)
    layers, out_width = build_fused_layers(params)

    # --- small batch ---------------------------------------------------------
    inp = jax.random.normal(kinp, (batch, ninput), jnp.float32)
    p1d_ref, logerr_ref = reference_forward(params, inp)

    # f32 parity path (HIGHEST): bit-level agreement with the fp32 reference.
    p1d_f32, le_f32 = mdn_forward_fused(layers, inp, out_width=out_width,
                                        use_bf16=False)
    p1d_f32 = jax.block_until_ready(p1d_f32)
    le_f32 = jax.block_until_ready(le_f32)
    np.testing.assert_allclose(np.asarray(p1d_f32), np.asarray(p1d_ref),
                               rtol=1e-5, atol=1e-5)
    np.testing.assert_allclose(np.asarray(le_f32), np.asarray(logerr_ref),
                               rtol=1e-5, atol=1e-5)

    # bf16 throughput default: looser tolerance (weights + activation chain bf16).
    p1d_bf, le_bf = mdn_forward_fused(layers, inp, out_width=out_width)
    p1d_bf = jax.block_until_ready(p1d_bf)
    le_bf = jax.block_until_ready(le_bf)
    np.testing.assert_allclose(np.asarray(p1d_bf), np.asarray(p1d_ref),
                               rtol=4e-2, atol=4e-2)
    np.testing.assert_allclose(np.asarray(le_bf), np.asarray(logerr_ref),
                               rtol=4e-2, atol=4e-2)
    assert p1d_bf.shape == (batch, ndeg + 1)
    assert le_bf.shape == (batch, ndeg + 1)

    # --- larger, ragged batch (exercises the multi-step "parallel" grid) -----
    big_b = 1000                                  # not a multiple of the tile
    inp_big = jax.random.normal(kbig, (big_b, ninput), jnp.float32)
    p1d_b, le_b = mdn_forward_fused(layers, inp_big, out_width=out_width)
    p1d_b = jax.block_until_ready(p1d_b)
    le_b = jax.block_until_ready(le_b)

    p1d_br, le_br = reference_forward(params, inp_big)
    np.testing.assert_allclose(np.asarray(p1d_b), np.asarray(p1d_br),
                               rtol=4e-2, atol=4e-2)
    np.testing.assert_allclose(np.asarray(le_b), np.asarray(le_br),
                               rtol=4e-2, atol=4e-2)
    assert p1d_b.shape == (big_b, ndeg + 1)
    assert le_b.shape == (big_b, ndeg + 1)

    print("KERNEL_OK")
</pallas_src>

<mosaic_0001>
module attributes {stable_mosaic.version = 11 : i64} {
  func.func @_fused_mlp_kernel(%arg0: i32, %arg1: memref<8x6xf32, #tpu.memory_space<vmem>>, %arg2: memref<6x10xf32, #tpu.memory_space<vmem>>, %arg3: memref<1x10xf32, #tpu.memory_space<vmem>>, %arg4: memref<10x40xf32, #tpu.memory_space<vmem>>, %arg5: memref<1x40xf32, #tpu.memory_space<vmem>>, %arg6: memref<40x70xf32, #tpu.memory_space<vmem>>, %arg7: memref<1x70xf32, #tpu.memory_space<vmem>>, %arg8: memref<70x100xf32, #tpu.memory_space<vmem>>, %arg9: memref<1x100xf32, #tpu.memory_space<vmem>>, %arg10: memref<100x100xf32, #tpu.memory_space<vmem>>, %arg11: memref<1x100xf32, #tpu.memory_space<vmem>>, %arg12: memref<100x128xf32, #tpu.memory_space<vmem>>, %arg13: memref<1x128xf32, #tpu.memory_space<vmem>>, %arg14: memref<8x128xf32, #tpu.memory_space<vmem>>) attributes {dimension_semantics = [#tpu.dimension_semantics<parallel>], iteration_bounds = array<i64: 1>, scalar_prefetch = 0 : i64, scratch_operands = 0 : i64, tpu.core_type = #tpu.core_type<tc>, window_params = [{transform_indices = @transform_0, window_bounds = array<i64: 8, 6>}, {pipeline_mode = #tpu.pipeline_mode<synchronous>, transform_indices = @transform_1, window_bounds = array<i64: 6, 10>}, {pipeline_mode = #tpu.pipeline_mode<synchronous>, transform_indices = @transform_2, window_bounds = array<i64: 1, 10>}, {pipeline_mode = #tpu.pipeline_mode<synchronous>, transform_indices = @transform_3, window_bounds = array<i64: 10, 40>}, {pipeline_mode = #tpu.pipeline_mode<synchronous>, transform_indices = @transform_4, window_bounds = array<i64: 1, 40>}, {pipeline_mode = #tpu.pipeline_mode<synchronous>, transform_indices = @transform_5, window_bounds = array<i64: 40, 70>}, {pipeline_mode = #tpu.pipeline_mode<synchronous>, transform_indices = @transform_6, window_bounds = array<i64: 1, 70>}, {pipeline_mode = #tpu.pipeline_mode<synchronous>, transform_indices = @transform_7, window_bounds = array<i64: 70, 100>}, {pipeline_mode = #tpu.pipeline_mode<synchronous>, transform_indices = @transform_8, window_bounds = array<i64: 1, 100>}, {pipeline_mode = #tpu.pipeline_mode<synchronous>, transform_indices = @transform_9, window_bounds = array<i64: 100, 100>}, {pipeline_mode = #tpu.pipeline_mode<synchronous>, transform_indices = @transform_10, window_bounds = array<i64: 1, 100>}, {pipeline_mode = #tpu.pipeline_mode<synchronous>, transform_indices = @transform_11, window_bounds = array<i64: 100, 128>}, {pipeline_mode = #tpu.pipeline_mode<synchronous>, transform_indices = @transform_12, window_bounds = array<i64: 1, 128>}, {transform_indices = @transform_13, window_bounds = array<i64: 8, 128>}]} {
    %c0 = arith.constant 0 : index
    %c0_0 = arith.constant 0 : index
    %0 = vector.load %arg1[%c0, %c0_0] : memref<8x6xf32, #tpu.memory_space<vmem>>, vector<8x6xf32>
    %c0_1 = arith.constant 0 : index
    %c0_2 = arith.constant 0 : index
    %1 = vector.load %arg2[%c0_1, %c0_2] : memref<6x10xf32, #tpu.memory_space<vmem>>, vector<6x10xf32>
    %c0_3 = arith.constant 0 : index
    %c0_4 = arith.constant 0 : index
    %2 = vector.load %arg3[%c0_3, %c0_4] : memref<1x10xf32, #tpu.memory_space<vmem>>, vector<1x10xf32>
    %cst = arith.constant dense<0.000000e+00> : vector<8x10xf32>
    %3 = tpu.matmul %0, %1, %cst {dimension_numbers = #tpu.dot_dimension_numbers<[1], [0], [0], [1], [0, 0, 1, 1], [], []>, precision = #tpu.contract_precision<fp32>} : vector<8x6xf32>, vector<6x10xf32>, vector<8x10xf32> -> vector<8x10xf32>
    %4 = vector.broadcast %2 : vector<1x10xf32> to vector<8x10xf32>
    %5 = arith.addf %3, %4 : vector<8x10xf32>
    %cst_5 = arith.constant 5.000000e-01 : f32
    %6 = vector.broadcast %cst_5 : f32 to vector<8x10xf32>
    %7 = arith.mulf %6, %5 : vector<8x10xf32>
    %8 = arith.maximumf %5, %7 : vector<8x10xf32>
    %c0_6 = arith.constant 0 : index
    %c0_7 = arith.constant 0 : index
    %9 = vector.load %arg4[%c0_6, %c0_7] : memref<10x40xf32, #tpu.memory_space<vmem>>, vector<10x40xf32>
    %c0_8 = arith.constant 0 : index
    %c0_9 = arith.constant 0 : index
    %10 = vector.load %arg5[%c0_8, %c0_9] : memref<1x40xf32, #tpu.memory_space<vmem>>, vector<1x40xf32>
    %cst_10 = arith.constant dense<0.000000e+00> : vector<8x40xf32>
    %11 = tpu.matmul %8, %9, %cst_10 {dimension_numbers = #tpu.dot_dimension_numbers<[1], [0], [0], [1], [0, 0, 1, 1], [], []>, precision = #tpu.contract_precision<fp32>} : vector<8x10xf32>, vector<10x40xf32>, vector<8x40xf32> -> vector<8x40xf32>
    %12 = vector.broadcast %10 : vector<1x40xf32> to vector<8x40xf32>
    %13 = arith.addf %11, %12 : vector<8x40xf32>
    %cst_11 = arith.constant 5.000000e-01 : f32
    %14 = vector.broadcast %cst_11 : f32 to vector<8x40xf32>
    %15 = arith.mulf %14, %13 : vector<8x40xf32>
    %16 = arith.maximumf %13, %15 : vector<8x40xf32>
    %c0_12 = arith.constant 0 : index
    %c0_13 = arith.constant 0 : index
    %17 = vector.load %arg6[%c0_12, %c0_13] : memref<40x70xf32, #tpu.memory_space<vmem>>, vector<40x70xf32>
    %c0_14 = arith.constant 0 : index
    %c0_15 = arith.constant 0 : index
    %18 = vector.load %arg7[%c0_14, %c0_15] : memref<1x70xf32, #tpu.memory_space<vmem>>, vector<1x70xf32>
    %cst_16 = arith.constant dense<0.000000e+00> : vector<8x70xf32>
    %19 = tpu.matmul %16, %17, %cst_16 {dimension_numbers = #tpu.dot_dimension_numbers<[1], [0], [0], [1], [0, 0, 1, 1], [], []>, precision = #tpu.contract_precision<fp32>} : vector<8x40xf32>, vector<40x70xf32>, vector<8x70xf32> -> vector<8x70xf32>
    %20 = vector.broadcast %18 : vector<1x70xf32> to vector<8x70xf32>
    %21 = arith.addf %19, %20 : vector<8x70xf32>
    %cst_17 = arith.constant 5.000000e-01 : f32
    %22 = vector.broadcast %cst_17 : f32 to vector<8x70xf32>
    %23 = arith.mulf %22, %21 : vector<8x70xf32>
    %24 = arith.maximumf %21, %23 : vector<8x70xf32>
    %c0_18 = arith.constant 0 : index
    %c0_19 = arith.constant 0 : index
    %25 = vector.load %arg8[%c0_18, %c0_19] : memref<70x100xf32, #tpu.memory_space<vmem>>, vector<70x100xf32>
    %c0_20 = arith.constant 0 : index
    %c0_21 = arith.constant 0 : index
    %26 = vector.load %arg9[%c0_20, %c0_21] : memref<1x100xf32, #tpu.memory_space<vmem>>, vector<1x100xf32>
    %cst_22 = arith.constant dense<0.000000e+00> : vector<8x100xf32>
    %27 = tpu.matmul %24, %25, %cst_22 {dimension_numbers = #tpu.dot_dimension_numbers<[1], [0], [0], [1], [0, 0, 1, 1], [], []>, precision = #tpu.contract_precision<fp32>} : vector<8x70xf32>, vector<70x100xf32>, vector<8x100xf32> -> vector<8x100xf32>
    %28 = vector.broadcast %26 : vector<1x100xf32> to vector<8x100xf32>
    %29 = arith.addf %27, %28 : vector<8x100xf32>
    %cst_23 = arith.constant 5.000000e-01 : f32
    %30 = vector.broadcast %cst_23 : f32 to vector<8x100xf32>
    %31 = arith.mulf %30, %29 : vector<8x100xf32>
    %32 = arith.maximumf %29, %31 : vector<8x100xf32>
    %c0_24 = arith.constant 0 : index
    %c0_25 = arith.constant 0 : index
    %33 = vector.load %arg10[%c0_24, %c0_25] : memref<100x100xf32, #tpu.memory_space<vmem>>, vector<100x100xf32>
    %c0_26 = arith.constant 0 : index
    %c0_27 = arith.constant 0 : index
    %34 = vector.load %arg11[%c0_26, %c0_27] : memref<1x100xf32, #tpu.memory_space<vmem>>, vector<1x100xf32>
    %cst_28 = arith.constant dense<0.000000e+00> : vector<8x100xf32>
    %35 = tpu.matmul %32, %33, %cst_28 {dimension_numbers = #tpu.dot_dimension_numbers<[1], [0], [0], [1], [0, 0, 1, 1], [], []>, precision = #tpu.contract_precision<fp32>} : vector<8x100xf32>, vector<100x100xf32>, vector<8x100xf32> -> vector<8x100xf32>
    %36 = vector.broadcast %34 : vector<1x100xf32> to vector<8x100xf32>
    %37 = arith.addf %35, %36 : vector<8x100xf32>
    %cst_29 = arith.constant 5.000000e-01 : f32
    %38 = vector.broadcast %cst_29 : f32 to vector<8x100xf32>
    %39 = arith.mulf %38, %37 : vector<8x100xf32>
    %40 = arith.maximumf %37, %39 : vector<8x100xf32>
    %c0_30 = arith.constant 0 : index
    %c0_31 = arith.constant 0 : index
    %41 = vector.load %arg12[%c0_30, %c0_31] : memref<100x128xf32, #tpu.memory_space<vmem>>, vector<100x128xf32>
    %c0_32 = arith.constant 0 : index
    %c0_33 = arith.constant 0 : index
    %42 = vector.load %arg13[%c0_32, %c0_33] : memref<1x128xf32, #tpu.memory_space<vmem>>, vector<1x128xf32>
    %cst_34 = arith.constant dense<0.000000e+00> : vector<8x128xf32>
    %43 = tpu.matmul %40, %41, %cst_34 {dimension_numbers = #tpu.dot_dimension_numbers<[1], [0], [0], [1], [0, 0, 1, 1], [], []>, precision = #tpu.contract_precision<fp32>} : vector<8x100xf32>, vector<100x128xf32>, vector<8x128xf32> -> vector<8x128xf32>
    %44 = vector.broadcast %42 : vector<1x128xf32> to vector<8x128xf32>
    %45 = arith.addf %43, %44 : vector<8x128xf32>
    %c0_35 = arith.constant 0 : index
    %c0_36 = arith.constant 0 : index
    %46 = vector.load %arg14[%c0_35, %c0_36] : memref<8x128xf32, #tpu.memory_space<vmem>>, vector<8x128xf32>
    tpu.vector_store %arg14[%c0_35, %c0_36], %45 {strides = array<i32>} : memref<8x128xf32, #tpu.memory_space<vmem>>, vector<8x128xf32>,
    return
  }
  func.func @transform_0(%arg0: i32) -> (i32, i32) {
    %c0_i32 = arith.constant 0 : i32
    %c0_i32_0 = arith.constant 0 : i32
    return %arg0, %c0_i32 : i32, i32
  }
  func.func @transform_1(%arg0: i32) -> (i32, i32) {
    %c0_i32 = arith.constant 0 : i32
    %c0_i32_0 = arith.constant 0 : i32
    %c0_i32_1 = arith.constant 0 : i32
    return %c0_i32, %c0_i32_0 : i32, i32
  }
  func.func @transform_2(%arg0: i32) -> (i32, i32) {
    %c0_i32 = arith.constant 0 : i32
    %c0_i32_0 = arith.constant 0 : i32
    %c0_i32_1 = arith.constant 0 : i32
    return %c0_i32, %c0_i32_0 : i32, i32
  }
  func.func @transform_3(%arg0: i32) -> (i32, i32) {
    %c0_i32 = arith.constant 0 : i32
    %c0_i32_0 = arith.constant 0 : i32
    %c0_i32_1 = arith.constant 0 : i32
    return %c0_i32, %c0_i32_0 : i32, i32
  }
  func.func @transform_4(%arg0: i32) -> (i32, i32) {
    %c0_i32 = arith.constant 0 : i32
    %c0_i32_0 = arith.constant 0 : i32
    %c0_i32_1 = arith.constant 0 : i32
    return %c0_i32, %c0_i32_0 : i32, i32
  }
  func.func @transform_5(%arg0: i32) -> (i32, i32) {
    %c0_i32 = arith.constant 0 : i32
    %c0_i32_0 = arith.constant 0 : i32
    %c0_i32_1 = arith.constant 0 : i32
    return %c0_i32, %c0_i32_0 : i32, i32
  }
  func.func @transform_6(%arg0: i32) -> (i32, i32) {
    %c0_i32 = arith.constant 0 : i32
    %c0_i32_0 = arith.constant 0 : i32
    %c0_i32_1 = arith.constant 0 : i32
    return %c0_i32, %c0_i32_0 : i32, i32
  }
  func.func @transform_7(%arg0: i32) -> (i32, i32) {
    %c0_i32 = arith.constant 0 : i32
    %c0_i32_0 = arith.constant 0 : i32
    %c0_i32_1 = arith.constant 0 : i32
    return %c0_i32, %c0_i32_0 : i32, i32
  }
  func.func @transform_8(%arg0: i32) -> (i32, i32) {
    %c0_i32 = arith.constant 0 : i32
    %c0_i32_0 = arith.constant 0 : i32
    %c0_i32_1 = arith.constant 0 : i32
    return %c0_i32, %c0_i32_0 : i32, i32
  }
  func.func @transform_9(%arg0: i32) -> (i32, i32) {
    %c0_i32 = arith.constant 0 : i32
    %c0_i32_0 = arith.constant 0 : i32
    %c0_i32_1 = arith.constant 0 : i32
    return %c0_i32, %c0_i32_0 : i32, i32
  }
  func.func @transform_10(%arg0: i32) -> (i32, i32) {
    %c0_i32 = arith.constant 0 : i32
    %c0_i32_0 = arith.constant 0 : i32
    %c0_i32_1 = arith.constant 0 : i32
    return %c0_i32, %c0_i32_0 : i32, i32
  }
  func.func @transform_11(%arg0: i32) -> (i32, i32) {
    %c0_i32 = arith.constant 0 : i32
    %c0_i32_0 = arith.constant 0 : i32
    %c0_i32_1 = arith.constant 0 : i32
    return %c0_i32, %c0_i32_0 : i32, i32
  }
  func.func @transform_12(%arg0: i32) -> (i32, i32) {
    %c0_i32 = arith.constant 0 : i32
    %c0_i32_0 = arith.constant 0 : i32
    %c0_i32_1 = arith.constant 0 : i32
    return %c0_i32, %c0_i32_0 : i32, i32
  }
  func.func @transform_13(%arg0: i32) -> (i32, i32) {
    %c0_i32 = arith.constant 0 : i32
    %c0_i32_0 = arith.constant 0 : i32
    return %arg0, %c0_i32 : i32, i32
  }
}

</mosaic_0001>

<bundles_post_ra>
// kernel: tpu_custom_call.1
= control target key start
LH: loop header
LB: loop body
LE: loop exit
PB: predicated region body
PF: predicated region fallthrough
CT: control target
= control target key end

     0   :  { %18 = vsyncpa [#allocation3], 0  ;;  %s5913_s0 = inlined_call_operand.hbm [shape: f32[8,6], index: 0, kind: input, shape index: {}]   ;;  %s5914_s1 = inlined_call_operand.hbm [shape: f32[6,10], index: 1, kind: input, shape index: {}]   ;;  %s5915_s2 = inlined_call_operand.vmem [shape: f32[1,10], index: 2, kind: input, shape index: {}]   ;;  %s5916_s3 = inlined_call_operand.hbm [shape: f32[10,40], index: 3, kind: input, shape index: {}]   ;;  %s5917_s4 = inlined_call_operand.vmem [shape: f32[1,40], index: 4, kind: input, shape index: {}]   ;;  %s5918_s5 = inlined_call_operand.hbm [shape: f32[40,70], index: 5, kind: input, shape index: {}]   ;;  %s5919_s6 = inlined_call_operand.vmem [shape: f32[1,70], index: 6, kind: input, shape index: {}]   ;;  %s5920_s7 = inlined_call_operand.hbm [shape: f32[70,100], index: 7, kind: input, shape index: {}]   ;;  %s5921_s8 = inlined_call_operand.vmem [shape: f32[1,100], index: 8, kind: input, shape index: {}]   ;;  %s5922_s9 = inlined_call_operand.hbm [shape: f32[100,100], index: 9, kind: input, shape index: {}]   ;;  %s5923_s10 = inlined_call_operand.vmem [shape: f32[1,100], index: 10, kind: input, shape index: {}]   ;;  %s5924_s11 = inlined_call_operand.hbm [shape: f32[100,128], index: 11, kind: input, shape index: {}]   ;;  %s5925_s12 = inlined_call_operand.vmem [shape: f32[1,128], index: 12, kind: input, shape index: {}]   ;;  %s5926_s13 = inlined_call_operand.hbm [shape: f32[8,128], index: 13, kind: output, shape index: {}]  }
   0x1   :  { %19 = vsyncpa [#allocation6], 0 }
   0x2   :  { %20 = vsyncpa [#allocation9], 0 }
   0x3   :  { %21 = vsyncpa [#allocation12], 0 }
   0x4   :  { %22 = vsyncpa [#allocation4], 0  ;;  %s4979_s25 = smov [#allocation5]   ;;  %s4793_s29 = scalar_lea.hbm %s5914_s1, 128 }
   0x5   :  { %s39_s26 = sshll.u32 %s4979_s25, 4  ;;  %p4794_p0 = scmp.ne.s32.totalorder %s5914_s1, %s4793_s29  ;;  %s40_s26 = int_to_ptr.vmem [resolvable:$true] %s39_s26 }
   0x6   :  { %p4797_p1 = scmp.lt.u32.totalorder %s4793_s29, %s5914_s1 }
   0x8   :  { %p4799_p2 = pnand %p4797_p1, %p4794_p0 }
   0xa   :  { %4802 = shalt.err (!%p4799_p2)
}
   0xb   :  { %s4803_s17 = scalar_lea.vmem %s40_s26, 128  ;;  %p4808_p4 = scmp.lt.s32.totalorder %s40_s26, %s40_s26 }
   0xc   :  { %p4804_p3 = scmp.ne.s32.totalorder %s40_s26, %s4803_s17  ;;  %p4809_p5 = scmp.lt.s32.totalorder %s4803_s17, %s4803_s17 }
   0xe   :  { %p4810_p6 = por %p4809_p5, %p4808_p4 }
  0x10   :  { %p4811_p7 = pnand %p4810_p6, %p4804_p3 }
  0x12   :  { %4814 = shalt.err (!%p4811_p7)
}
  0x13   :  { %42 = dma.hbm_to_vmem [thread:$0]  %s5914_s1, 128, %s40_s26, [#allocation6]  }
  0x14   :  { %s4980_s20 = smov [#allocation8]   ;;  %s4981_s22 = smov [#allocation11]  }
  0x15   :  { %s64_s21 = sshll.u32 %s4980_s20, 4  ;;  %s92_s23 = sshll.u32 %s4981_s22, 4  ;;  %s65_s21 = int_to_ptr.vmem [resolvable:$true] %s64_s21  ;;  %s93_s23 = int_to_ptr.vmem [resolvable:$true] %s92_s23 }
  0x16   :  { %s4815_s27 = scalar_lea.hbm %s5918_s5, 640 }
  0x17   :  { %p4816_p8 = scmp.ne.s32.totalorder %s5918_s5, %s4815_s27  ;;  %p4819_p9 = scmp.lt.u32.totalorder %s4815_s27, %s5918_s5 }
  0x19   :  { %p4821_p10 = pnand %p4819_p9, %p4816_p8 }
  0x1b   :  { %4824 = shalt.err (!%p4821_p10)
}
  0x1c   :  { %s4825_s1 = scalar_lea.vmem %s65_s21, 640  ;;  %p4830_p12 = scmp.lt.s32.totalorder %s65_s21, %s65_s21 }
  0x1d   :  { %p4826_p11 = scmp.ne.s32.totalorder %s65_s21, %s4825_s1  ;;  %p4831_p13 = scmp.lt.s32.totalorder %s4825_s1, %s4825_s1 }
  0x1f   :  { %p4832_p0 = por %p4831_p13, %p4830_p12 }
  0x21   :  { %p4833_p1 = pnand %p4832_p0, %p4826_p11 }
  0x23   :  { %4836 = shalt.err (!%p4833_p1)
}
  0x24   :  { %s4982_s26 = smov 128   ;;  %s4983_s15 = smov 8  }
  0x25   :  { %70 = dma.hbm_to_vmem [thread:$0]  %s5918_s5, 640, %s65_s21, [#allocation9], %s4982_s26, %s4982_s26, %s4983_s15  }
  0x26   :  { %s4837_s20 = scalar_lea.hbm %s5922_s9, 1664 }
  0x27   :  { %p4838_p2 = scmp.ne.s32.totalorder %s5922_s9, %s4837_s20  ;;  %p4841_p3 = scmp.lt.u32.totalorder %s4837_s20, %s5922_s9 }
  0x29   :  { %p4843_p4 = pnand %p4841_p3, %p4838_p2 }
  0x2b   :  { %4846 = shalt.err (!%p4843_p4)
}
  0x2c   :  { %s4847_s28 = scalar_lea.vmem %s93_s23, 1664  ;;  %p4852_p6 = scmp.lt.s32.totalorder %s93_s23, %s93_s23 }
  0x2d   :  { %p4848_p5 = scmp.ne.s32.totalorder %s93_s23, %s4847_s28  ;;  %p4853_p7 = scmp.lt.s32.totalorder %s4847_s28, %s4847_s28 }
  0x2f   :  { %p4854_p8 = por %p4853_p7, %p4852_p6 }
  0x31   :  { %p4855_p9 = pnand %p4854_p8, %p4848_p5 }
  0x33   :  { %4858 = shalt.err (!%p4855_p9)
}
  0x34   :  { %98 = dma.hbm_to_vmem [thread:$0]  %s5922_s9, 1664, %s93_s23, [#allocation12], %s4982_s26, %s4982_s26, %s4983_s15  }
  0x35   :  { %s4984_s29 = smov [#allocation2]   ;;  %s4985_s14 = smov [#allocation7]  }
  0x36   :  { %s29_s30 = sshll.u32 %s4984_s29, 4  ;;  %s50_s1 = sshll.u32 %s4985_s14, 4  ;;  %s30_s30 = int_to_ptr.vmem [resolvable:$true] %s29_s30  ;;  %s51_s1 = int_to_ptr.vmem [resolvable:$true] %s50_s1 }
  0x37   :  { %s4859_s18 = scalar_lea.hbm %s5913_s0, 128 }
  0x38   :  { %p4860_p10 = scmp.ne.s32.totalorder %s5913_s0, %s4859_s18  ;;  %p4863_p11 = scmp.lt.u32.totalorder %s4859_s18, %s5913_s0 }
  0x3a   :  { %p4865_p12 = pnand %p4863_p11, %p4860_p10 }
  0x3c   :  { %4868 = shalt.err (!%p4865_p12)
}
  0x3d   :  { %s4869_s9 = scalar_lea.vmem %s30_s30, 128  ;;  %p4874_p0 = scmp.lt.s32.totalorder %s30_s30, %s30_s30 }
  0x3e   :  { %p4870_p13 = scmp.ne.s32.totalorder %s30_s30, %s4869_s9  ;;  %p4875_p1 = scmp.lt.s32.totalorder %s4869_s9, %s4869_s9 }
  0x40   :  { %p4876_p2 = por %p4875_p1, %p4874_p0 }
  0x42   :  { %p4877_p3 = pnand %p4876_p2, %p4870_p13 }
  0x44   :  { %4880 = shalt.err (!%p4877_p3)
}
  0x45   :  { %32 = dma.hbm_to_vmem [thread:$0]  %s5913_s0, 128, %s30_s30, [#allocation3]  }
  0x46   :  { %s4881_s5 = scalar_lea.hbm %s5916_s3, 256 }
  0x47   :  { %p4882_p4 = scmp.ne.s32.totalorder %s5916_s3, %s4881_s5  ;;  %p4885_p5 = scmp.lt.u32.totalorder %s4881_s5, %s5916_s3 }
  0x49   :  { %p4887_p6 = pnand %p4885_p5, %p4882_p4 }
  0x4b   :  { %4890 = shalt.err (!%p4887_p6)
}
  0x4c   :  { %s4891_s17 = scalar_lea.vmem %s51_s1, 256  ;;  %p4896_p8 = scmp.lt.s32.totalorder %s51_s1, %s51_s1 }
  0x4d   :  { %p4892_p7 = scmp.ne.s32.totalorder %s51_s1, %s4891_s17  ;;  %p4897_p9 = scmp.lt.s32.totalorder %s4891_s17, %s4891_s17 }
  0x4f   :  { %p4898_p10 = por %p4897_p9, %p4896_p8 }
  0x51   :  { %p4899_p11 = pnand %p4898_p10, %p4892_p7 }
  0x53   :  { %4902 = shalt.err (!%p4899_p11)
}
  0x54   :  { %56 = dma.hbm_to_vmem [thread:$0]  %s5916_s3, 256, %s51_s1, [#allocation6], %s4982_s26, %s4982_s26, %s4983_s15  }
  0x55   :  { %s4986_s18 = smov [#allocation10]   ;;  %s4987_s20 = smov [#allocation13]  }
  0x56   :  { %s78_s19 = sshll.u32 %s4986_s18, 4  ;;  %s106_s22 = sshll.u32 %s4987_s20, 4  ;;  %s79_s19 = int_to_ptr.vmem [resolvable:$true] %s78_s19  ;;  %s107_s22 = int_to_ptr.vmem [resolvable:$true] %s106_s22 }
  0x57   :  { %s4903_s23 = scalar_lea.hbm %s5920_s7, 1152 }
  0x58   :  { %p4904_p12 = scmp.ne.s32.totalorder %s5920_s7, %s4903_s23  ;;  %p4907_p13 = scmp.lt.u32.totalorder %s4903_s23, %s5920_s7 }
  0x5a   :  { %p4909_p0 = pnand %p4907_p13, %p4904_p12 }
  0x5c   :  { %4912 = shalt.err (!%p4909_p0)
}
  0x5d   :  { %s4913_s3 = scalar_lea.vmem %s79_s19, 1152  ;;  %p4918_p2 = scmp.lt.s32.totalorder %s79_s19, %s79_s19 }
  0x5e   :  { %p4914_p1 = scmp.ne.s32.totalorder %s79_s19, %s4913_s3  ;;  %p4919_p3 = scmp.lt.s32.totalorder %s4913_s3, %s4913_s3 }
  0x60   :  { %p4920_p4 = por %p4919_p3, %p4918_p2 }
  0x62   :  { %p4921_p5 = pnand %p4920_p4, %p4914_p1 }
  0x64   :  { %4924 = shalt.err (!%p4921_p5)
}
  0x65   :  { %84 = dma.hbm_to_vmem [thread:$0]  %s5920_s7, 1152, %s79_s19, [#allocation9], %s4982_s26, %s4982_s26, %s4983_s15  }
  0x66   :  { %s4925_s16 = scalar_lea.hbm %s5924_s11, 1664 }
  0x67   :  { %p4926_p6 = scmp.ne.s32.totalorder %s5924_s11, %s4925_s16  ;;  %p4929_p7 = scmp.lt.u32.totalorder %s4925_s16, %s5924_s11 }
  0x69   :  { %p4931_p8 = pnand %p4929_p7, %p4926_p6 }
  0x6b   :  { %4934 = shalt.err (!%p4931_p8)
}
  0x6c   :  { %s4935_s20 = scalar_lea.vmem %s107_s22, 1664  ;;  %p4940_p10 = scmp.lt.s32.totalorder %s107_s22, %s107_s22 }
  0x6d   :  { %p4936_p9 = scmp.ne.s32.totalorder %s107_s22, %s4935_s20  ;;  %p4941_p11 = scmp.lt.s32.totalorder %s4935_s20, %s4935_s20 }
  0x6f   :  { %p4942_p12 = por %p4941_p11, %p4940_p10 }
  0x71   :  { %p4943_p13 = pnand %p4942_p12, %p4936_p9 }
  0x73   :  { %4946 = shalt.err (!%p4943_p13)
}
  0x74   :  { %112 = dma.hbm_to_vmem [thread:$0]  %s5924_s11, 1664, %s107_s22, [#allocation12], %s4982_s26, %s4982_s26, %s4983_s15  }
  0x75   :  { %4969 = dma.done.wait [#allocation3], 128  }
  0x76   :  { %4970 = vsyncadd [#allocation3], 4294967168 }
  0x77   :  { %4971 = dma.done.wait [#allocation6], 384  }
  0x78   :  { %4972 = vsyncadd [#allocation6], 4294966912 }
  0x79   :  { %4973 = dma.done.wait [#allocation9], 1792  }
  0x7a   :  { %4974 = vsyncadd [#allocation9], 4294965504 }
  0x7b   :  { %4975 = dma.done.wait [#allocation12], 3328  }
  0x7c   :  { %4976 = vsyncadd [#allocation12], 4294963968  ;;  %v4988_v0 = vmov 0.0   ;;  %vm4989_vm0 = vmmov 0   ;;  %vm149_vm1 = vcmask 1045504   ;;  %vm145_vm2 = vcmask 48128  }
  0x7d   :  { %3749 = vmatprep.subr.mxu0 %v4988_v0  ;;  %3751 = vmatprep.mubr.msk.f32.mxu0 %vm4989_vm0, %v4988_v0  ;;  %v137_v1 = vld [vmem:[#allocation5] sm:$0x3f]  ;;  %v136_v2 = vld [vmem:[#allocation2] sm:$0xff]  ;;  %v602_v15 = vld [vmem:[#allocation7 + $0x8] sm:$0x3]  ;;  %vm614_vm3 = vcmask 1041408  }
  0x7e   :  { %3783 = vmatprep.mubr.msk.f32.mxu1 %vm4989_vm0, %v4988_v0  ;;  %v151_v3 = vsel %vm149_vm1, %v137_v1, 0  ;;  %v147_v4 = vsel %vm145_vm2, %v136_v2, 0  ;;  %v601_v16 = vld [vmem:[#allocation7] sm:$0xff]  ;;  %v616_v17 = vsel %vm614_vm3, %v602_v15, 0  ;;  %v4990_v18 = vmov 0.0|0.0   ;;  %v1079_v45 = vld [vmem:[#allocation8] sm:$0xff] }
  0x7f   :  { %v154_v5 = vand.u32 4294901760, %v151_v3  ;;  %v219_v6 = vand.u32 4294901760, %v147_v4  ;;  %4373 = vmatprep.subr.bf16.mxu1 %v4990_v18  ;;  %v619_v19 = vand.u32 4294901760, %v601_v16  ;;  %v622_v20 = vand.u32 4294901760, %v616_v17  ;;  %v3449_v33 = vld [vmem:[%s5915_s2] ss:$0 sm:$0xff] }
  0x80   :  { %vm610_vm4 = vcmask 80896   ;;  %v1080_v46 = vld [vmem:[#allocation8 + $0x8] sm:$0xff]  ;;  %v1096_v47 = vand.u32 4294901760, %v1079_v45  ;;  %v1081_v50 = vld [vmem:[#allocation8 + $0x10] sm:$0xff]  ;;  %v1082_v51 = vld [vmem:[#allocation8 + $0x18] sm:$0xff]  ;;  %vm1091_vm5 = vcmask 326656  }
  0x81   :  { %3750 = vmatpush3.msra.mxu0 %v154_v5  ;;  %v231_v7 = vsub.f32 %v151_v3, %v154_v5  ;;  %v220_v8 = vsub.f32 %v147_v4, %v219_v6  ;;  %v4374_v21 = vpack.c.bf16 %v622_v20, %v619_v19  ;;  %v697_v22 = vsub.f32 %v601_v16, %v619_v19  ;;  %v1083_v59 = vld [vmem:[#allocation8 + $0x20] sm:$0xff]  ;;  %s4991_s25 = smov [#allocation14]  }
  0x82   :  { %3754 = vmatprep.subr.mxu0 %v4988_v0  ;;  %v704_v23 = vsub.f32 %v616_v17, %v622_v20  ;;  %v1099_v48 = vand.u32 4294901760, %v1080_v46  ;;  %v1177_v52 = vsub.f32 %v1079_v45, %v1096_v47  ;;  %v1102_v54 = vand.u32 4294901760, %v1081_v50  ;;  %v3450_v16 = vld [vmem:[%s5917_s4] ss:$0 sm:$0xff]  ;;  %s3437_s27 = sshll.u32 %s4991_s25, 4  ;;  %s3438_s27 = int_to_ptr.vmem [resolvable:$true] %s3437_s27 }
  0x83   :  { %v221_v9 = vand.u32 4294901760, %v220_v8  ;;  %v232_v10 = vand.u32 4294901760, %v231_v7  ;;  %4375 = vmatpush3.bf16.msra.mxu1 %v4374_v21  ;;  %v698_v24 = vand.u32 4294901760, %v697_v22  ;;  %v1105_v55 = vand.u32 4294901760, %v1082_v51  ;;  %s4947_s28 = scalar_lea.vmem %s3438_s27, 128  ;;  %p4952_p1 = scmp.lt.s32.totalorder %s3438_s27, %s3438_s27 }
  0x84   :  { %v705_v25 = vand.u32 4294901760, %v704_v23  ;;  %4376 = vmatprep.subr.bf16.mxu1 %v4990_v18  ;;  %v4380_v31 = vpack.c.bf16 %v704_v23, %v697_v22  ;;  %v5207_v49 = vpack.c.bf16 %v1099_v48, %v1096_v47  ;;  %v1184_v53 = vsub.f32 %v1080_v46, %v1099_v48  ;;  %v1601_v48 = vld [vmem:[#allocation10 + $0x30] sm:$0xff]  ;;  %p4948_p0 = scmp.ne.s32.totalorder %s3438_s27, %s4947_s28  ;;  %p4953_p2 = scmp.lt.s32.totalorder %s4947_s28, %s4947_s28 }
  0x85   :  { %v222_v11 = vsub.f32 %v220_v8, %v221_v9  ;;  %v233_v12 = vsub.f32 %v231_v7, %v232_v10  ;;  %v699_v26 = vsub.f32 %v697_v22, %v698_v24  ;;  %v5211_v56 = vpack.c.bf16 %v1105_v55, %v1102_v54 }
  0x86   :  { %v706_v27 = vsub.f32 %v704_v23, %v705_v25  ;;  %v4386_v32 = vpack.c.bf16 %v705_v25, %v698_v24  ;;  %v1191_v57 = vsub.f32 %v1081_v50, %v1102_v54  ;;  %v1198_v58 = vsub.f32 %v1082_v51, %v1105_v55  ;;  %p4954_p3 = por %p4953_p2, %p4952_p1 }
  0x87   :  { %v223_v13 = vand.u32 4294901760, %v222_v11  ;;  %v234_v14 = vand.u32 4294901760, %v233_v12  ;;  %v700_v28 = vand.u32 4294901760, %v699_v26  ;;  %v1178_v60 = vand.u32 4294901760, %v1177_v52 }
  0x88   :  { %v707_v29 = vand.u32 4294901760, %v706_v27  ;;  %v1185_v61 = vand.u32 4294901760, %v1184_v53  ;;  %v5214_v62 = vand.u32 4294901760, %v1083_v59  ;;  %v1192_v4 = vand.u32 4294901760, %v1191_v57  ;;  %p4955_p4 = pnand %p4954_p3, %p4948_p0 }
  0x89   :  { %3752 = vmatmul.mubr.f32.vlgmr.msra.gmra.mrb[0].mxu0 %v223_v13  ;;  %v1179_v63 = vsub.f32 %v1177_v52, %v1178_v60  ;;  %v4404_v12 = vpack.c.bf16 %v1184_v53, %v1177_v52  ;;  %v4407_v13 = vpack.c.bf16 %v1198_v58, %v1191_v57  ;;  %v1637_v52 = vand.u32 4294901760, %v1601_v48 }
  0x8a   :  { %3755 = vmatpush3.msra.mxu0 %v234_v14  ;;  %3756 = vmatprep.mubr.msk.f32.mxu0 %vm4989_vm0, %v4988_v0  ;;  %v4377_v30 = vpack.c.bf16 %v707_v29, %v700_v28  ;;  %v1186_v1 = vsub.f32 %v1184_v53, %v1185_v61  ;;  %v4416_v14 = vpack.c.bf16 %v1185_v61, %v1178_v60  ;;  %vm1611_vm6 = vcmask 572416  }
  0x8b   :  { %3759 = vmatprep.subr.mxu0 %v4988_v0  ;;  %v1180_v2 = vand.u32 4294901760, %v1179_v63  ;;  %v1205_v26 = vsub.f32 %v1083_v59, %v5214_v62  ;;  %v5282_v60 = vsub.f32 %v1601_v48, %v1637_v52  ;;  %vm2194_vm7 = vcmask 1043456  }
  0x8c   :  { %v1187_v3 = vand.u32 4294901760, %v1186_v1  ;;  %vm2190_vm8 = vcmask 818176  }
  0x8d   :  { %v1206_v29 = vand.u32 4294901760, %v1205_v26 }
  0x91   :  { %3757 = vmatmul.mubr.f32.vlgmr.msra.gmra.mrb[0].mxu0 %v219_v6 }
  0x92   :  { %3760 = vmatpush3.msra.mxu0 %v231_v7  ;;  %3761 = vmatprep.mubr.msk.f32.mxu0 %vm4989_vm0, %v4988_v0  ;;  %v1193_v7 = vsub.f32 %v1191_v57, %v1192_v4 }
  0x93   :  { %3764 = vmatprep.subr.mxu0 %v4988_v0 }
  0x99   :  { %3762 = vmatmul.mubr.f32.vlgmr.msra.gmra.mrb[0].mxu0 %v220_v8 }
  0x9a   :  { %3765 = vmatpush3.msra.mxu0 %v154_v5  ;;  %3766 = vmatprep.mubr.msk.f32.mxu0 %vm4989_vm0, %v4988_v0 }
  0x9b   :  { %3769 = vmatprep.subr.mxu0 %v4988_v0 }
  0xa1   :  { %3767 = vmatmul.mubr.f32.vlgmr.msra.gmra.mrb[0].mxu0 %v221_v9  ;;  %v1194_v9 = vand.u32 4294901760, %v1193_v7 }
  0xa2   :  { %3770 = vmatpush3.msra.mxu0 %v232_v10  ;;  %3771 = vmatprep.mubr.msk.f32.mxu0 %vm4989_vm0, %v4988_v0 }
  0xa3   :  { %3774 = vmatprep.subr.mxu0 %v4988_v0 }
  0xa9   :  { %3772 = vmatmul.mubr.f32.vlgmr.msra.gmra.mrb[0].mxu0 %v219_v6 }
  0xaa   :  { %3775 = vmatpush3.msra.mxu0 %v154_v5  ;;  %3776 = vmatprep.mubr.msk.f32.mxu0 %vm4989_vm0, %v4988_v0  ;;  %v1199_v5 = vand.u32 4294901760, %v1198_v58 }
  0xab   :  { %4391 = vmatprep.subr.bf16.mxu0 %v4990_v18 }
  0xac   :  { %v1200_v8 = vsub.f32 %v1198_v58, %v1199_v5  ;;  %v4419_v15 = vpack.c.bf16 %v1199_v5, %v1192_v4  ;;  %v1603_v58 = vld [vmem:[#allocation10 + $0x40] sm:$0x3f] }
  0xae   :  { %v1201_v10 = vand.u32 4294901760, %v1200_v8 }
  0xb0   :  { %v4401_v11 = vpack.c.bf16 %v1201_v10, %v1194_v9 }
  0xb1   :  { %3777 = vmatmul.mubr.f32.vlgmr.msra.gmra.mrb[0].mxu0 %v219_v6  ;;  %v4398_v6 = vpack.c.bf16 %v1187_v3, %v1180_v2 }
  0xb2   :  { %3831 = vmatprep.mubr.msk.f32.mxu0 %vm4989_vm0, %v4988_v0  ;;  %4393 = vmatpush3.bf16.msra.mxu0 %v5207_v49 }
  0xb3   :  { %4394 = vmatprep.subr.bf16.mxu0 %v4990_v18 }
  0xb6   :  { %4396 = vmatpush3.bf16.msra.mxu0 %v5211_v56 }
  0xb7   :  { %3829 = vmatprep.subr.mxu0 %v4988_v0 }
  0xba   :  { %3830 = vmatpush3.msra.mxu0 %v5214_v62 }
  0xbb   :  { %4397 = vmatprep.subr.bf16.mxu0 %v4990_v18 }
 0x184   :  { %v595_v34 = vpop.f32.mrb[0].mxu0 }
 0x185   :  { %v4715_v35 = vadd.f32 %v3449_v33, %v595_v34  ;;  %v3778_v36 = vpop.f32.mrb[1].mxu0  ;;  %v1595_v33 = vld [vmem:[#allocation10] sm:$0xff]  ;;  %v1596_v34 = vld [vmem:[#allocation10 + $0x8] sm:$0xff] }
 0x186   :  { %v1622_v36 = vand.u32 4294901760, %v1596_v34 }
 0x187   :  { %v599_v37 = vmul.f32 0.5, %v4715_v35 }
 0x188   :  { %v5268_v51 = vsub.f32 %v1596_v34, %v1622_v36 }
 0x189   :  { %v600_v38 = vmax.f32 %v4715_v35, %v599_v37  ;;  %v1619_v35 = vand.u32 4294901760, %v1595_v33 }
 0x18a   :  { %v1712_v1 = vand.u32 4294901760, %v5268_v51 }
 0x18b   :  { %v612_v39 = vsel %vm610_vm4, %v600_v38, 0  ;;  %v5256_v37 = vpack.c.bf16 %v1622_v36, %v1619_v35  ;;  %v1597_v38 = vld [vmem:[#allocation10 + $0x10] sm:$0xff]  ;;  %v5266_v50 = vsub.f32 %v1595_v33, %v1619_v35 }
 0x18c   :  { %v685_v40 = vand.u32 4294901760, %v612_v39  ;;  %v1713_v4 = vsub.f32 %v5268_v51, %v1712_v1 }
 0x18d   :  { %v1705_v63 = vand.u32 4294901760, %v5266_v50 }
 0x18e   :  { %v686_v41 = vsub.f32 %v612_v39, %v685_v40  ;;  %v1598_v39 = vld [vmem:[#allocation10 + $0x18] sm:$0xff]  ;;  %v1714_v8 = vand.u32 4294901760, %v1713_v4 }
 0x18f   :  { %v1706_v3 = vsub.f32 %v5266_v50, %v1705_v63  ;;  %v5320_v34 = vpack.c.bf16 %v1712_v1, %v1705_v63 }
 0x190   :  { %v687_v42 = vand.u32 4294901760, %v686_v41 }
 0x191   :  { %v1707_v7 = vand.u32 4294901760, %v1706_v3 }
 0x192   :  { %v688_v43 = vsub.f32 %v686_v41, %v687_v42 }
 0x194   :  { %v689_v44 = vand.u32 4294901760, %v688_v43  ;;  %v1599_v43 = vld [vmem:[#allocation10 + $0x20] sm:$0xff] }
 0x195   :  { %v1631_v45 = vand.u32 4294901760, %v1599_v43 }
 0x196   :  { %3784 = vmatmul.mubr.f32.vlgmr.msra.gmra.mrb[0].mxu1 %v689_v44  ;;  %v1600_v44 = vld [vmem:[#allocation10 + $0x28] sm:$0xff] }
 0x197   :  { %4378 = vmatpush3.bf16.msra.mxu1 %v4377_v30  ;;  %3790 = vmatprep.mubr.msk.f32.mxu1 %vm4989_vm0, %v4988_v0  ;;  %v1634_v46 = vand.u32 4294901760, %v1600_v44 }
 0x198   :  { %4379 = vmatprep.subr.bf16.mxu1 %v4990_v18 }
 0x199   :  { %v5264_v47 = vpack.c.bf16 %v1634_v46, %v1631_v45  ;;  %v5278_v57 = vsub.f32 %v1600_v44, %v1634_v46 }
 0x19e   :  { %3791 = vmatmul.mubr.f32.vlgmr.msra.gmra.mrb[0].mxu1 %v685_v40 }
 0x19f   :  { %4381 = vmatpush3.bf16.msra.mxu1 %v4380_v31  ;;  %3797 = vmatprep.mubr.msk.f32.mxu1 %vm4989_vm0, %v4988_v0  ;;  %v1207_v31 = vsub.f32 %v1205_v26, %v1206_v29 }
 0x1a0   :  { %4382 = vmatprep.subr.bf16.mxu1 %v4990_v18 }
 0x1a6   :  { %3798 = vmatmul.mubr.f32.vlgmr.msra.gmra.mrb[0].mxu1 %v686_v41  ;;  %v1628_v41 = vand.u32 4294901760, %v1598_v39 }
 0x1a7   :  { %4384 = vmatpush3.bf16.msra.mxu1 %v4374_v21  ;;  %3804 = vmatprep.mubr.msk.f32.mxu1 %vm4989_vm0, %v4988_v0 }
 0x1a8   :  { %4385 = vmatprep.subr.bf16.mxu1 %v4990_v18  ;;  %v5274_v55 = vsub.f32 %v1598_v39, %v1628_v41  ;;  %v2170_v39 = vld [vmem:[#allocation11] sm:$0xff] }
 0x1ae   :  { %3805 = vmatmul.mubr.f32.vlgmr.msra.gmra.mrb[0].mxu1 %v687_v42 }
 0x1af   :  { %4387 = vmatpush3.bf16.msra.mxu1 %v4386_v32  ;;  %3811 = vmatprep.mubr.msk.f32.mxu1 %vm4989_vm0, %v4988_v0  ;;  %v1208_v32 = vand.u32 4294901760, %v1207_v31 }
 0x1b0   :  { %4388 = vmatprep.subr.bf16.mxu1 %v4990_v18 }
 0x1b6   :  { %3812 = vmatmul.mubr.f32.vlgmr.msra.gmra.mrb[0].mxu1 %v685_v40 }
 0x1b7   :  { %4390 = vmatpush3.bf16.msra.mxu1 %v4374_v21  ;;  %3818 = vmatprep.mubr.msk.f32.mxu1 %vm4989_vm0, %v4988_v0 }
 0x1b8   :  { %4427 = vmatprep.subr.bf16.mxu1 %v4990_v18 }
 0x1be   :  { %3819 = vmatmul.mubr.f32.vlgmr.msra.gmra.mrb[0].mxu1 %v685_v40  ;;  %v1625_v40 = vand.u32 4294901760, %v1597_v38 }
 0x1bf   :  { %3917 = vmatprep.mubr.msk.f32.mxu1 %vm4989_vm0, %v4988_v0  ;;  %4429 = vmatpush3.bf16.msra.mxu1 %v5256_v37 }
 0x1c0   :  { %4430 = vmatprep.subr.bf16.mxu1 %v4990_v18  ;;  %v5260_v42 = vpack.c.bf16 %v1628_v41, %v1625_v40  ;;  %v5272_v54 = vsub.f32 %v1597_v38, %v1625_v40  ;;  %v2171_v40 = vld [vmem:[#allocation11 + $0x8] sm:$0xff]  ;;  %v2172_v41 = vld [vmem:[#allocation11 + $0x10] sm:$0xff] }
 0x1c1   :  { %v2202_v44 = vand.u32 4294901760, %v2171_v40  ;;  %v2205_v46 = vand.u32 4294901760, %v2172_v41 }
 0x1c2   :  { %v1719_v5 = vand.u32 4294901760, %v5272_v54  ;;  %v4455_v31 = vpack.c.bf16 %v5274_v55, %v5272_v54 }
 0x1c3   :  { %4432 = vmatpush3.bf16.msra.mxu1 %v5260_v42 }
 0x1c4   :  { %4433 = vmatprep.subr.bf16.mxu1 %v4990_v18  ;;  %v1720_v9 = vsub.f32 %v5272_v54, %v1719_v5 }
 0x1c7   :  { %4435 = vmatpush3.bf16.msra.mxu1 %v5264_v47 }
 0x1c8   :  { %4436 = vmatprep.subr.bf16.mxu1 %v4990_v18 }
 0x291   :  { %v1073_v17 = vpop.f32.mrb[0].mxu1 }
 0x292   :  { %v4716_v19 = vadd.f32 %v3450_v16, %v1073_v17  ;;  %v3820_v20 = vpop.f32.mrb[1].mxu1 }
 0x294   :  { %v1077_v21 = vmul.f32 0.5, %v4716_v19 }
 0x296   :  { %v1078_v22 = vmax.f32 %v4716_v19, %v1077_v21 }
 0x298   :  { %v1093_v23 = vsel %vm1091_vm5, %v1078_v22, 0  ;;  %v1747_v22 = vand.u32 4294901760, %v5282_v60 }
 0x299   :  { %v1165_v24 = vand.u32 4294901760, %v1093_v23 }
 0x29b   :  { %v1166_v25 = vsub.f32 %v1093_v23, %v1165_v24 }
 0x29d   :  { %v1167_v27 = vand.u32 4294901760, %v1166_v25 }
 0x29f   :  { %v1168_v28 = vsub.f32 %v1166_v25, %v1167_v27 }
 0x2a1   :  { %v1169_v30 = vand.u32 4294901760, %v1168_v28 }
 0x2a3   :  { %3832 = vmatmul.mubr.f32.vlgmr.msra.gmra.mrb[2].mxu0 %v1169_v30  ;;  %v4452_v30 = vpack.c.bf16 %v5268_v51, %v5266_v50  ;;  %v5332_v51 = vsub.f32 %v2171_v40, %v2202_v44 }
 0x2a4   :  { %4399 = vmatpush3.bf16.msra.mxu0 %v4398_v6  ;;  %3844 = vmatprep.mubr.msk.f32.mxu0 %vm4989_vm0, %v4988_v0  ;;  %v1726_v6 = vand.u32 4294901760, %v5274_v55 }
 0x2a5   :  { %4400 = vmatprep.subr.bf16.mxu0 %v4990_v18 }
 0x2a6   :  { %v1727_v10 = vsub.f32 %v5274_v55, %v1726_v6  ;;  %v5322_v35 = vpack.c.bf16 %v1726_v6, %v1719_v5  ;;  %v3451_v55 = vld [vmem:[%s5919_s6] ss:$0 sm:$0xff] }
 0x2a8   :  { %4402 = vmatpush3.bf16.msra.mxu0 %v4401_v11  ;;  %v4440_v11 = vpack.c.bf16 %v1714_v8, %v1707_v7 }
 0x2a9   :  { %3842 = vmatprep.subr.mxu0 %v4988_v0 }
 0x2ac   :  { %3843 = vmatpush3.msra.mxu0 %v1208_v32 }
 0x2ad   :  { %3845 = vmatmul.mubr.f32.vlgmr.msra.gmra.mrb[2].mxu0 %v1165_v24  ;;  %4403 = vmatprep.subr.bf16.mxu0 %v4990_v18 }
 0x2ae   :  { %4405 = vmatpush3.bf16.msra.mxu0 %v4404_v12  ;;  %3857 = vmatprep.mubr.msk.f32.mxu0 %vm4989_vm0, %v4988_v0  ;;  %v1721_v12 = vand.u32 4294901760, %v1720_v9 }
 0x2af   :  { %4406 = vmatprep.subr.bf16.mxu0 %v4990_v18 }
 0x2b2   :  { %4408 = vmatpush3.bf16.msra.mxu0 %v4407_v13  ;;  %v1728_v13 = vand.u32 4294901760, %v1727_v10 }
 0x2b3   :  { %3855 = vmatprep.subr.mxu0 %v4988_v0 }
 0x2b4   :  { %v4443_v16 = vpack.c.bf16 %v1728_v13, %v1721_v12  ;;  %v2176_v12 = vld [vmem:[#allocation11 + $0x30] sm:$0xff]  ;;  %v2177_v13 = vld [vmem:[#allocation11 + $0x38] sm:$0xff] }
 0x2b6   :  { %3856 = vmatpush3.msra.mxu0 %v1205_v26 }
 0x2b7   :  { %3858 = vmatmul.mubr.f32.vlgmr.msra.gmra.mrb[2].mxu0 %v1166_v25  ;;  %4409 = vmatprep.subr.bf16.mxu0 %v4990_v18  ;;  %v1748_v25 = vsub.f32 %v5282_v60, %v1747_v22 }
 0x2b8   :  { %4411 = vmatpush3.bf16.msra.mxu0 %v5207_v49  ;;  %3870 = vmatprep.mubr.msk.f32.mxu0 %vm4989_vm0, %v4988_v0 }
 0x2b9   :  { %4412 = vmatprep.subr.bf16.mxu0 %v4990_v18 }
 0x2bc   :  { %4414 = vmatpush3.bf16.msra.mxu0 %v5211_v56 }
 0x2bd   :  { %3868 = vmatprep.subr.mxu0 %v4988_v0 }
 0x2c0   :  { %3869 = vmatpush3.msra.mxu0 %v5214_v62 }
 0x2c1   :  { %3871 = vmatmul.mubr.f32.vlgmr.msra.gmra.mrb[2].mxu0 %v1167_v27  ;;  %4415 = vmatprep.subr.bf16.mxu0 %v4990_v18  ;;  %v1749_v27 = vand.u32 4294901760, %v1748_v25 }
 0x2c2   :  { %4417 = vmatpush3.bf16.msra.mxu0 %v4416_v14  ;;  %3883 = vmatprep.mubr.msk.f32.mxu0 %vm4989_vm0, %v4988_v0 }
 0x2c3   :  { %4418 = vmatprep.subr.bf16.mxu0 %v4990_v18 }
 0x2c6   :  { %4420 = vmatpush3.bf16.msra.mxu0 %v4419_v15  ;;  %v1740_v15 = vand.u32 4294901760, %v5278_v57 }
 0x2c7   :  { %3881 = vmatprep.subr.mxu0 %v4988_v0 }
 0x2c8   :  { %v1741_v19 = vsub.f32 %v5278_v57, %v1740_v15 }
 0x2ca   :  { %3882 = vmatpush3.msra.mxu0 %v1206_v29  ;;  %v1742_v21 = vand.u32 4294901760, %v1741_v19 }
 0x2cb   :  { %3884 = vmatmul.mubr.f32.vlgmr.msra.gmra.mrb[2].mxu0 %v1165_v24  ;;  %4421 = vmatprep.subr.bf16.mxu0 %v4990_v18 }
 0x2cc   :  { %4423 = vmatpush3.bf16.msra.mxu0 %v5207_v49  ;;  %3896 = vmatprep.mubr.msk.f32.mxu0 %vm4989_vm0, %v4988_v0  ;;  %v1602_v49 = vld [vmem:[#allocation10 + $0x38] sm:$0xff] }
 0x2cd   :  { %4424 = vmatprep.subr.bf16.mxu0 %v4990_v18  ;;  %v1640_v53 = vand.u32 4294901760, %v1602_v49 }
 0x2cf   :  { %v5280_v59 = vpack.c.bf16 %v1640_v53, %v1637_v52  ;;  %v5284_v61 = vsub.f32 %v1602_v49, %v1640_v53  ;;  %v5334_v52 = vsub.f32 %v2172_v41, %v2205_v46 }
 0x2d0   :  { %4426 = vmatpush3.bf16.msra.mxu0 %v5211_v56  ;;  %v5276_v56 = vsub.f32 %v1599_v43, %v1631_v45  ;;  %v2199_v43 = vand.u32 4294901760, %v2170_v39  ;;  %v2173_v45 = vld [vmem:[#allocation11 + $0x18] sm:$0xff] }
 0x2d1   :  { %3894 = vmatprep.subr.mxu0 %v4988_v0  ;;  %4438 = vmatpush3.bf16.msra.mxu1 %v5280_v59  ;;  %v1754_v23 = vand.u32 4294901760, %v5284_v61  ;;  %v4461_v33 = vpack.c.bf16 %v5284_v61, %v5282_v60  ;;  %v2208_v48 = vand.u32 4294901760, %v2173_v45 }
 0x2d2   :  { %3915 = vmatprep.subr.mxu1 %v4988_v0  ;;  %v1733_v14 = vand.u32 4294901760, %v5276_v56  ;;  %v4458_v32 = vpack.c.bf16 %v5278_v57, %v5276_v56  ;;  %v5328_v49 = vpack.c.bf16 %v2202_v44, %v2199_v43  ;;  %v5330_v50 = vsub.f32 %v2170_v39, %v2199_v43 }
 0x2d3   :  { %v1755_v26 = vsub.f32 %v5284_v61, %v1754_v23  ;;  %v5326_v38 = vpack.c.bf16 %v1754_v23, %v1747_v22  ;;  %v5336_v53 = vsub.f32 %v2173_v45, %v2208_v48  ;;  %v5339_v54 = vpack.c.bf16 %v2208_v48, %v2205_v46  ;;  %v2181_v22 = vld [vmem:[#allocation11 + $0x58] sm:$0xff] }
 0x2d4   :  { %3895 = vmatpush3.msra.mxu0 %v5214_v62  ;;  %v5287_v62 = vsel %vm149_vm1, %v1603_v58, 0  ;;  %v1734_v17 = vsub.f32 %v5276_v56, %v1733_v14  ;;  %v5324_v36 = vpack.c.bf16 %v1740_v15, %v1733_v14  ;;  %v2220_v14 = vand.u32 4294901760, %v2177_v13  ;;  %v2178_v15 = vld [vmem:[#allocation11 + $0x40] sm:$0xff] }
 0x2d5   :  { %3897 = vmatmul.mubr.f32.vlgmr.msra.gmra.mrb[2].mxu0 %v1165_v24  ;;  %4499 = vmatprep.subr.bf16.mxu0 %v4990_v18  ;;  %v5293_v2 = vand.u32 4294901760, %v5287_v62  ;;  %v1756_v28 = vand.u32 4294901760, %v1755_v26  ;;  %v5941_v43 = vand.u32 4294901760, %v5334_v52  ;;  %v5937_v44 = vand.u32 4294901760, %v5336_v53 }
 0x2d6   :  { %4051 = vmatprep.mubr.msk.f32.mxu0 %vm4989_vm0, %v4988_v0  ;;  %v1735_v20 = vand.u32 4294901760, %v1734_v17  ;;  %4501 = vmatpush3.bf16.msra.mxu0 %v5328_v49  ;;  %v2223_v17 = vand.u32 4294901760, %v2178_v15 }
 0x2d7   :  { %3916 = vmatpush3.msra.mxu1 %v5293_v2  ;;  %v4449_v29 = vpack.c.bf16 %v1756_v28, %v1749_v27  ;;  %4502 = vmatprep.subr.bf16.mxu0 %v4990_v18  ;;  %v1760_v7 = vsub.f32 %v5287_v62, %v5293_v2  ;;  %v5424_v28 = vsub.f32 %v2177_v13, %v2220_v14 }
 0x2d8   :  { %4439 = vmatprep.subr.bf16.mxu1 %v4990_v18  ;;  %v4446_v24 = vpack.c.bf16 %v1742_v21, %v1735_v20  ;;  %v2180_v21 = vld [vmem:[#allocation11 + $0x50] sm:$0xff]  ;;  %v2304_v48 = vsub.f32 %v5334_v52, %v5941_v43 }
 0x2d9   :  { %v1761_v8 = vand.u32 4294901760, %v1760_v7  ;;  %v2229_v23 = vand.u32 4294901760, %v2180_v21 }
 0x2da   :  { %4504 = vmatpush3.bf16.msra.mxu0 %v5339_v54 }
 0x2db   :  { %4505 = vmatprep.subr.bf16.mxu0 %v4990_v18  ;;  %v1762_v9 = vsub.f32 %v1760_v7, %v1761_v8 }
 0x2dd   :  { %v1763_v10 = vand.u32 4294901760, %v1762_v9 }
 0x3a8   :  { %v1589_v56 = vpop.f32.mrb[2].mxu0 }
 0x3a9   :  { %v4717_v57 = vadd.f32 %v3451_v55, %v1589_v56  ;;  %v3898_v58 = vpop.f32.mrb[3].mxu0  ;;  %v2311_v55 = vsub.f32 %v5336_v53, %v5937_v44 }
 0x3ab   :  { %v1593_v60 = vmul.f32 0.5, %v4717_v57  ;;  %v2312_v58 = vand.u32 4294901760, %v2311_v55 }
 0x3ad   :  { %v1594_v61 = vmax.f32 %v4717_v57, %v1593_v60  ;;  %v2305_v57 = vand.u32 4294901760, %v2304_v48 }
 0x3af   :  { %v1613_v63 = vsel %vm1611_vm6, %v1594_v61, 0 }
 0x3b0   :  { %v5347_v1 = vand.u32 4294901760, %v1613_v63 }
 0x3b2   :  { %v1693_v3 = vsub.f32 %v1613_v63, %v5347_v1  ;;  %v5464_v63 = vpack.c.bf16 %v2312_v58, %v2305_v57  ;;  %v3452_v57 = vld [vmem:[%s5921_s8] ss:$0 sm:$0xff] }
 0x3b4   :  { %v1694_v4 = vand.u32 4294901760, %v1693_v3 }
 0x3b6   :  { %v1695_v5 = vsub.f32 %v1693_v3, %v1694_v4 }
 0x3b8   :  { %v1696_v6 = vand.u32 4294901760, %v1695_v5 }
 0x3ba   :  { %3918 = vmatmul.mubr.f32.vlgmr.msra.gmra.mrb[2].mxu1 %v1696_v6 }
 0x3bb   :  { %4441 = vmatpush3.bf16.msra.mxu1 %v4440_v11  ;;  %3938 = vmatprep.mubr.msk.f32.mxu1 %vm4989_vm0, %v4988_v0 }
 0x3bc   :  { %4442 = vmatprep.subr.bf16.mxu1 %v4990_v18 }
 0x3bf   :  { %4444 = vmatpush3.bf16.msra.mxu1 %v4443_v16  ;;  %v2179_v16 = vld [vmem:[#allocation11 + $0x48] sm:$0xff] }
 0x3c0   :  { %4445 = vmatprep.subr.bf16.mxu1 %v4990_v18  ;;  %v2226_v19 = vand.u32 4294901760, %v2179_v16 }
 0x3c2   :  { %v5414_v20 = vpack.c.bf16 %v2226_v19, %v2223_v17 }
 0x3c3   :  { %4447 = vmatpush3.bf16.msra.mxu1 %v4446_v24  ;;  %v2232_v24 = vand.u32 4294901760, %v2181_v22 }
 0x3c4   :  { %4448 = vmatprep.subr.bf16.mxu1 %v4990_v18 }
 0x3c7   :  { %4450 = vmatpush3.bf16.msra.mxu1 %v4449_v29  ;;  %v2182_v29 = vld [vmem:[#allocation11 + $0x60] sm:$0xf] }
 0x3c8   :  { %3936 = vmatprep.subr.mxu1 %v4988_v0 }
 0x3cb   :  { %3937 = vmatpush3.msra.mxu1 %v1763_v10 }
 0x3cc   :  { %3939 = vmatmul.mubr.f32.vlgmr.msra.gmra.mrb[2].mxu1 %v5347_v1  ;;  %4451 = vmatprep.subr.bf16.mxu1 %v4990_v18 }
 0x3cd   :  { %4453 = vmatpush3.bf16.msra.mxu1 %v4452_v30  ;;  %3959 = vmatprep.mubr.msk.f32.mxu1 %vm4989_vm0, %v4988_v0  ;;  %v5426_v30 = vsub.f32 %v2178_v15, %v2223_v17 }
 0x3ce   :  { %4454 = vmatprep.subr.bf16.mxu1 %v4990_v18 }
 0x3d1   :  { %4456 = vmatpush3.bf16.msra.mxu1 %v4455_v31  ;;  %v5428_v31 = vsub.f32 %v2179_v16, %v2226_v19 }
 0x3d2   :  { %4457 = vmatprep.subr.bf16.mxu1 %v4990_v18 }
 0x3d3   :  { %v4548_v48 = vpack.c.bf16 %v5428_v31, %v5426_v30 }
 0x3d5   :  { %4459 = vmatpush3.bf16.msra.mxu1 %v4458_v32  ;;  %v5430_v32 = vpack.c.bf16 %v2232_v24, %v2229_v23 }
 0x3d6   :  { %4460 = vmatprep.subr.bf16.mxu1 %v4990_v18 }
 0x3d9   :  { %4462 = vmatpush3.bf16.msra.mxu1 %v4461_v33  ;;  %v5432_v33 = vsub.f32 %v2180_v21, %v2229_v23 }
 0x3da   :  { %3957 = vmatprep.subr.mxu1 %v4988_v0 }
 0x3db   :  { %v5928_v16 = vand.u32 4294901760, %v5432_v33 }
 0x3dd   :  { %3958 = vmatpush3.msra.mxu1 %v1760_v7  ;;  %v5932_v7 = vand.u32 4294901760, %v5424_v28  ;;  %v2360_v21 = vsub.f32 %v5432_v33, %v5928_v16 }
 0x3de   :  { %3960 = vmatmul.mubr.f32.vlgmr.msra.gmra.mrb[2].mxu1 %v1693_v3  ;;  %4463 = vmatprep.subr.bf16.mxu1 %v4990_v18 }
 0x3df   :  { %4465 = vmatpush3.bf16.msra.mxu1 %v5256_v37  ;;  %3980 = vmatprep.mubr.msk.f32.mxu1 %vm4989_vm0, %v4988_v0  ;;  %v2339_v10 = vsub.f32 %v5424_v28, %v5932_v7  ;;  %v2361_v23 = vand.u32 4294901760, %v2360_v21  ;;  %v2804_v21 = vld [vmem:[#allocation13 + $0x10] sm:$0xff] }
 0x3e0   :  { %4466 = vmatprep.subr.bf16.mxu1 %v4990_v18 }
 0x3e3   :  { %4468 = vmatpush3.bf16.msra.mxu1 %v5260_v42 }
 0x3e4   :  { %4469 = vmatprep.subr.bf16.mxu1 %v4990_v18 }
 0x3e7   :  { %4471 = vmatpush3.bf16.msra.mxu1 %v5264_v47 }
 0x3e8   :  { %4472 = vmatprep.subr.bf16.mxu1 %v4990_v18 }
 0x3eb   :  { %4474 = vmatpush3.bf16.msra.mxu1 %v5280_v59 }
 0x3ec   :  { %3978 = vmatprep.subr.mxu1 %v4988_v0 }
 0x3ef   :  { %3979 = vmatpush3.msra.mxu1 %v5293_v2 }
 0x3f0   :  { %3981 = vmatmul.mubr.f32.vlgmr.msra.gmra.mrb[2].mxu1 %v1694_v4  ;;  %4475 = vmatprep.subr.bf16.mxu1 %v4990_v18 }
 0x3f1   :  { %4477 = vmatpush3.bf16.msra.mxu1 %v5320_v34  ;;  %4001 = vmatprep.mubr.msk.f32.mxu1 %vm4989_vm0, %v4988_v0  ;;  %v5434_v34 = vsub.f32 %v2181_v22, %v2232_v24 }
 0x3f2   :  { %4478 = vmatprep.subr.bf16.mxu1 %v4990_v18 }
 0x3f3   :  { %v5927_v17 = vand.u32 4294901760, %v5434_v34 }
 0x3f5   :  { %4480 = vmatpush3.bf16.msra.mxu1 %v5322_v35  ;;  %v5947_v35 = vand.u32 4294901760, %v5330_v50  ;;  %v2367_v22 = vsub.f32 %v5434_v34, %v5927_v17 }
 0x3f6   :  { %4481 = vmatprep.subr.bf16.mxu1 %v4990_v18 }
 0x3f7   :  { %v2290_v40 = vsub.f32 %v5330_v50, %v5947_v35  ;;  %v2368_v24 = vand.u32 4294901760, %v2367_v22 }
 0x3f9   :  { %4483 = vmatpush3.bf16.msra.mxu1 %v5324_v36  ;;  %v5945_v36 = vand.u32 4294901760, %v5332_v51  ;;  %v2291_v45 = vand.u32 4294901760, %v2290_v40  ;;  %v4536_v40 = vpack.c.bf16 %v5332_v51, %v5330_v50 }
 0x3fa   :  { %4484 = vmatprep.subr.bf16.mxu1 %v4990_v18 }
 0x3fb   :  { %v2297_v41 = vsub.f32 %v5332_v51, %v5945_v36 }
 0x3fd   :  { %4486 = vmatpush3.bf16.msra.mxu1 %v5326_v38  ;;  %v5440_v38 = vsel %vm2194_vm7, %v2182_v29, 0  ;;  %v2298_v46 = vand.u32 4294901760, %v2297_v41  ;;  %v5502_v29 = vpack.c.bf16 %v2368_v24, %v2361_v23  ;;  %v4539_v41 = vpack.c.bf16 %v5336_v53, %v5334_v52  ;;  %v2805_v24 = vld [vmem:[#allocation13 + $0x18] sm:$0xff] }
 0x3fe   :  { %3999 = vmatprep.subr.mxu1 %v4988_v0  ;;  %v5444_v39 = vand.u32 4294901760, %v5440_v38 }
 0x3ff   :  { %v4518_v56 = vpack.c.bf16 %v2298_v46, %v2291_v45 }
 0x401   :  { %4000 = vmatpush3.msra.mxu1 %v1761_v8 }
 0x402   :  { %4002 = vmatmul.mubr.f32.vlgmr.msra.gmra.mrb[2].mxu1 %v5347_v1  ;;  %4487 = vmatprep.subr.bf16.mxu1 %v4990_v18 }
 0x403   :  { %4489 = vmatpush3.bf16.msra.mxu1 %v5256_v37  ;;  %4022 = vmatprep.mubr.msk.f32.mxu1 %vm4989_vm0, %v4988_v0  ;;  %v2174_v37 = vld [vmem:[#allocation11 + $0x20] sm:$0xff] }
 0x404   :  { %4490 = vmatprep.subr.bf16.mxu1 %v4990_v18  ;;  %v2211_v62 = vand.u32 4294901760, %v2174_v37 }
 0x406   :  { %v5418_v25 = vsub.f32 %v2174_v37, %v2211_v62 }
 0x407   :  { %4492 = vmatpush3.bf16.msra.mxu1 %v5260_v42  ;;  %v2175_v42 = vld [vmem:[#allocation11 + $0x28] sm:$0xff] }
 0x408   :  { %4493 = vmatprep.subr.bf16.mxu1 %v4990_v18  ;;  %v2214_v11 = vand.u32 4294901760, %v2175_v42  ;;  %v5936_v60 = vand.u32 4294901760, %v5418_v25 }
 0x40a   :  { %v5420_v26 = vsub.f32 %v2175_v42, %v2214_v11  ;;  %v2340_v42 = vand.u32 4294901760, %v2339_v10 }
 0x40b   :  { %4495 = vmatpush3.bf16.msra.mxu1 %v5264_v47  ;;  %v5406_v47 = vpack.c.bf16 %v2214_v11, %v2211_v62  ;;  %v5930_v62 = vand.u32 4294901760, %v5426_v30  ;;  %v5929_v11 = vand.u32 4294901760, %v5428_v31 }
 0x40c   :  { %4496 = vmatprep.subr.bf16.mxu1 %v4990_v18  ;;  %v5935_v61 = vand.u32 4294901760, %v5420_v26  ;;  %v4542_v45 = vpack.c.bf16 %v5420_v26, %v5418_v25 }
 0x40d   :  { %4507 = vmatpush3.bf16.msra.mxu0 %v5406_v47  ;;  %v2346_v13 = vsub.f32 %v5426_v30, %v5930_v62 }
 0x40e   :  { %4508 = vmatprep.subr.bf16.mxu0 %v4990_v18  ;;  %v2325_v3 = vsub.f32 %v5420_v26, %v5935_v61 }
 0x40f   :  { %4498 = vmatpush3.bf16.msra.mxu1 %v5280_v59  ;;  %v2217_v59 = vand.u32 4294901760, %v2176_v12 }
 0x410   :  { %4020 = vmatprep.subr.mxu1 %v4988_v0  ;;  %v2326_v5 = vand.u32 4294901760, %v2325_v3 }
 0x411   :  { %v5422_v27 = vsub.f32 %v2176_v12, %v2217_v59 }
 0x413   :  { %4021 = vmatpush3.msra.mxu1 %v5293_v2  ;;  %v5410_v2 = vpack.c.bf16 %v2220_v14, %v2217_v59  ;;  %v5934_v6 = vand.u32 4294901760, %v5422_v27  ;;  %v2353_v59 = vsub.f32 %v5428_v31, %v5929_v11  ;;  %v2347_v14 = vand.u32 4294901760, %v2346_v13 }
 0x414   :  { %4023 = vmatmul.mubr.f32.vlgmr.msra.gmra.mrb[2].mxu1 %v5347_v1  ;;  %4625 = vmatprep.subr.bf16.mxu1 %v4990_v18  ;;  %v2318_v1 = vsub.f32 %v5418_v25, %v5936_v60  ;;  %v4545_v46 = vpack.c.bf16 %v5424_v28, %v5422_v27 }
 0x415   :  { %4254 = vmatprep.mubr.msk.f32.mxu1 %vm4989_vm0, %v4988_v0  ;;  %4510 = vmatpush3.bf16.msra.mxu0 %v5410_v2  ;;  %v2332_v9 = vsub.f32 %v5422_v27, %v5934_v6  ;;  %v2354_v15 = vand.u32 4294901760, %v2353_v59 }
 0x416   :  { %4511 = vmatprep.subr.bf16.mxu0 %v4990_v18  ;;  %v2319_v4 = vand.u32 4294901760, %v2318_v1 }
 0x417   :  { %v2333_v37 = vand.u32 4294901760, %v2332_v9  ;;  %v5494_v19 = vpack.c.bf16 %v2354_v15, %v2347_v14  ;;  %v2802_v14 = vld [vmem:[#allocation13] sm:$0xff]  ;;  %v2803_v15 = vld [vmem:[#allocation13 + $0x8] sm:$0xff] }
 0x418   :  { %v5474_v8 = vpack.c.bf16 %v2326_v5, %v2319_v4  ;;  %v2829_v22 = vand.u32 4294901760, %v2802_v14  ;;  %v2832_v23 = vand.u32 4294901760, %v2803_v15 }
 0x419   :  { %4513 = vmatpush3.bf16.msra.mxu0 %v5414_v20  ;;  %v5484_v12 = vpack.c.bf16 %v2340_v42, %v2333_v37 }
 0x41a   :  { %4514 = vmatprep.subr.bf16.mxu0 %v4990_v18  ;;  %v5549_v17 = vsub.f32 %v2803_v15, %v2832_v23  ;;  %v5553_v11 = vpack.c.bf16 %v2832_v23, %v2829_v22 }
 0x41d   :  { %4516 = vmatpush3.bf16.msra.mxu0 %v5430_v32 }
 0x41e   :  { %4049 = vmatprep.subr.mxu0 %v4988_v0 }
 0x421   :  { %4050 = vmatpush3.msra.mxu0 %v5444_v39 }
 0x422   :  { %4517 = vmatprep.subr.bf16.mxu0 %v4990_v18 }
 0x4e7   :  { %v2164_v58 = vpop.f32.mrb[2].mxu1 }
 0x4e8   :  { %v4718_v1 = vadd.f32 %v3452_v57, %v2164_v58  ;;  %v4024_v3 = vpop.f32.mrb[3].mxu1  ;;  %v2835_v57 = vand.u32 4294901760, %v2804_v21  ;;  %v5532_v58 = vld [vmem:[#allocation13 + $0x20] sm:$0xff] }
 0x4e9   :  { %v5538_v3 = vsub.f32 %v5440_v38, %v5444_v39 }
 0x4ea   :  { %v2168_v4 = vmul.f32 0.5, %v4718_v1  ;;  %v5551_v16 = vsub.f32 %v2804_v21, %v2835_v57  ;;  %v5939_v21 = vand.u32 4294901760, %v5549_v17 }
 0x4ec   :  { %v2169_v5 = vmax.f32 %v4718_v1, %v2168_v4  ;;  %v5534_v1 = vld [vmem:[#allocation13 + $0x28] sm:$0xff]  ;;  %v5931_v4 = vand.u32 4294901760, %v5532_v58  ;;  %v2927_v61 = vsub.f32 %v5549_v17, %v5939_v21 }
 0x4ee   :  { %v2192_v9 = vsel %vm2190_vm8, %v2169_v5, 0  ;;  %v5933_v5 = vand.u32 4294901760, %v5534_v1  ;;  %v5561_v62 = vsub.f32 %v5532_v58, %v5931_v4 }
 0x4ef   :  { %v5520_v10 = vand.u32 4294901760, %v2192_v9 }
 0x4f0   :  { %v2947_v4 = vand.u32 4294901760, %v5561_v62 }
 0x4f1   :  { %v5523_v37 = vsub.f32 %v2192_v9, %v5520_v10  ;;  %v5542_v9 = vld [vmem:[#allocation13 + $0x30] sm:$0xff] }
 0x4f3   :  { %v5943_v42 = vand.u32 4294901760, %v5523_v37 }
 0x4f5   :  { %v2279_v13 = vsub.f32 %v5523_v37, %v5943_v42 }
 0x4f7   :  { %v2280_v59 = vand.u32 4294901760, %v2279_v13  ;;  %v5544_v13 = vld [vmem:[#allocation13 + $0x38] sm:$0xff] }
 0x4f8   :  { %v5944_v23 = vand.u32 4294901760, %v5544_v13 }
 0x4f9   :  { %4052 = vmatmul.mubr.f32.vlgmr.msra.gmra.mrb[4].mxu0 %v2280_v59  ;;  %v5547_v59 = vsub.f32 %v2802_v14, %v2829_v22  ;;  %v5940_v14 = vand.u32 4294901760, %v5542_v9  ;;  %v5942_v22 = vand.u32 4294901760, %v5551_v16 }
 0x4fa   :  { %4519 = vmatpush3.bf16.msra.mxu0 %v4518_v56  ;;  %4080 = vmatprep.mubr.msk.f32.mxu0 %vm4989_vm0, %v4988_v0  ;;  %v2838_v56 = vand.u32 4294901760, %v2805_v24  ;;  %v5594_v44 = vsub.f32 %v5544_v13, %v5944_v23 }
 0x4fb   :  { %4520 = vmatprep.subr.bf16.mxu0 %v4990_v18  ;;  %v5938_v15 = vand.u32 4294901760, %v5547_v59  ;;  %v2934_v60 = vsub.f32 %v5551_v16, %v5942_v22 }
 0x4fc   :  { %v5556_v38 = vsub.f32 %v2805_v24, %v2838_v56  ;;  %v2968_v36 = vand.u32 4294901760, %v5594_v44  ;;  %v5610_v55 = vpack.c.bf16 %v2838_v56, %v2835_v57 }
 0x4fd   :  { %v2920_v6 = vsub.f32 %v5547_v59, %v5938_v15  ;;  %v2948_v15 = vsub.f32 %v5561_v62, %v2947_v4  ;;  %v2935_v43 = vand.u32 4294901760, %v2934_v60 }
 0x4fe   :  { %4522 = vmatpush3.bf16.msra.mxu0 %v5464_v63  ;;  %v5566_v63 = vsub.f32 %v5534_v1, %v5933_v5  ;;  %v5946_v24 = vand.u32 4294901760, %v5556_v38  ;;  %v5579_v5 = vsub.f32 %v5542_v9, %v5940_v14  ;;  %v2928_v14 = vand.u32 4294901760, %v2927_v61 }
 0x4ff   :  { %4523 = vmatprep.subr.bf16.mxu0 %v4990_v18  ;;  %v2921_v21 = vand.u32 4294901760, %v2920_v6  ;;  %v2949_v61 = vand.u32 4294901760, %v2948_v15 }
 0x500   :  { %v2954_v7 = vand.u32 4294901760, %v5566_v63  ;;  %v2961_v23 = vand.u32 4294901760, %v5579_v5 }
 0x501   :  { %v4626_v35 = vpack.c.bf16 %v2928_v14, %v2921_v21  ;;  %v5953_v14 = vand.u32 4294901760, %v5336_v53  ;;  %v5956_v21 = vand.u32 4294901760, %v5422_v27 }
 0x502   :  { %4525 = vmatpush3.bf16.msra.mxu0 %v5474_v8  ;;  %v2941_v8 = vsub.f32 %v5556_v38, %v5946_v24  ;;  %v2955_v22 = vsub.f32 %v5566_v63, %v2954_v7  ;;  %v2373_v24 = vand.u32 4294901760, %v5538_v3 }
 0x503   :  { %4526 = vmatprep.subr.bf16.mxu0 %v4990_v18  ;;  %4627 = vmatpush3.bf16.msra.mxu1 %v4626_v35 }
 0x504   :  { %v2942_v42 = vand.u32 4294901760, %v2941_v8  ;;  %v2956_v6 = vand.u32 4294901760, %v2955_v22  ;;  %4628 = vmatprep.subr.bf16.mxu1 %v4990_v18  ;;  %v2962_v8 = vsub.f32 %v5579_v5, %v2961_v23  ;;  %v2374_v57 = vsub.f32 %v5538_v3, %v2373_v24 }
 0x505   :  { %v5958_v22 = vand.u32 4294901760, %v5426_v30 }
 0x506   :  { %4528 = vmatpush3.bf16.msra.mxu0 %v5484_v12  ;;  %v4629_v60 = vpack.c.bf16 %v2942_v42, %v2935_v43  ;;  %v2969_v12 = vsub.f32 %v5594_v44, %v2968_v36  ;;  %v4632_v35 = vpack.c.bf16 %v2956_v6, %v2949_v61  ;;  %v2963_v43 = vand.u32 4294901760, %v2962_v8 }
 0x507   :  { %4529 = vmatprep.subr.bf16.mxu0 %v4990_v18  ;;  %v2375_v56 = vand.u32 4294901760, %v2374_v57 }
 0x508   :  { %4630 = vmatpush3.bf16.msra.mxu1 %v4629_v60  ;;  %v2970_v42 = vand.u32 4294901760, %v2969_v12  ;;  %v5959_v60 = vand.u32 4294901760, %v5428_v31  ;;  %v2812_v31 = vld [vmem:[#allocation13 + $0x50] sm:$0xff] }
 0x509   :  { %4631 = vmatprep.subr.bf16.mxu1 %v4990_v18 }
 0x50a   :  { %4531 = vmatpush3.bf16.msra.mxu0 %v5494_v19  ;;  %v4635_v19 = vpack.c.bf16 %v2970_v42, %v2963_v43  ;;  %v4584_v61 = vpack.c.bf16 %v5959_v60, %v5958_v22  ;;  %v3453_v60 = vld [vmem:[%s5923_s10] ss:$0 sm:$0xff] }
 0x50b   :  { %4532 = vmatprep.subr.bf16.mxu0 %v4990_v18 }
 0x50c   :  { %4633 = vmatpush3.bf16.msra.mxu1 %v4632_v35 }
 0x50d   :  { %4634 = vmatprep.subr.bf16.mxu1 %v4990_v18 }
 0x50e   :  { %4534 = vmatpush3.bf16.msra.mxu0 %v5502_v29  ;;  %v5948_v29 = vpack.c.bf16 %v5434_v34, %v5432_v33 }
 0x50f   :  { %4078 = vmatprep.subr.mxu0 %v4988_v0 }
 0x510   :  { %4636 = vmatpush3.bf16.msra.mxu1 %v4635_v19 }
 0x511   :  { %4637 = vmatprep.subr.bf16.mxu1 %v4990_v18 }
 0x512   :  { %4079 = vmatpush3.msra.mxu0 %v2375_v56 }
 0x513   :  { %4081 = vmatmul.mubr.f32.vlgmr.msra.gmra.mrb[4].mxu0 %v5520_v10  ;;  %4535 = vmatprep.subr.bf16.mxu0 %v4990_v18 }
 0x514   :  { %4537 = vmatpush3.bf16.msra.mxu0 %v4536_v40  ;;  %4109 = vmatprep.mubr.msk.f32.mxu0 %vm4989_vm0, %v4988_v0  ;;  %v5949_v40 = vand.u32 4294901760, %v5330_v50  ;;  %v5954_v50 = vand.u32 4294901760, %v5418_v25  ;;  %v5960_v25 = vand.u32 4294901760, %v5432_v33 }
 0x515   :  { %4538 = vmatprep.subr.bf16.mxu0 %v4990_v18 }
 0x518   :  { %4540 = vmatpush3.bf16.msra.mxu0 %v4539_v41  ;;  %v5950_v41 = vand.u32 4294901760, %v5332_v51  ;;  %v5955_v51 = vand.u32 4294901760, %v5420_v26  ;;  %v5961_v26 = vand.u32 4294901760, %v5434_v34 }
 0x519   :  { %4541 = vmatprep.subr.bf16.mxu0 %v4990_v18 }
 0x51a   :  { %v4587_v6 = vpack.c.bf16 %v5961_v26, %v5960_v25 }
 0x51c   :  { %4543 = vmatpush3.bf16.msra.mxu0 %v4542_v45  ;;  %v4572_v45 = vpack.c.bf16 %v5950_v41, %v5949_v40 }
 0x51d   :  { %4544 = vmatprep.subr.bf16.mxu0 %v4990_v18 }
 0x520   :  { %4546 = vmatpush3.bf16.msra.mxu0 %v4545_v46  ;;  %v5951_v46 = vand.u32 4294901760, %v5523_v37 }
 0x521   :  { %4547 = vmatprep.subr.bf16.mxu0 %v4990_v18 }
 0x524   :  { %4549 = vmatpush3.bf16.msra.mxu0 %v4548_v48  ;;  %v5952_v48 = vand.u32 4294901760, %v5334_v52  ;;  %v5957_v52 = vand.u32 4294901760, %v5424_v28 }
 0x525   :  { %4550 = vmatprep.subr.bf16.mxu0 %v4990_v18 }
 0x526   :  { %v4575_v15 = vpack.c.bf16 %v5953_v14, %v5952_v48  ;;  %v4581_v53 = vpack.c.bf16 %v5957_v52, %v5956_v21 }
 0x528   :  { %4552 = vmatpush3.bf16.msra.mxu0 %v5948_v29 }
 0x529   :  { %4107 = vmatprep.subr.mxu0 %v4988_v0 }
 0x52c   :  { %4108 = vmatpush3.msra.mxu0 %v5538_v3 }
 0x52d   :  { %4110 = vmatmul.mubr.f32.vlgmr.msra.gmra.mrb[4].mxu0 %v5523_v37  ;;  %4553 = vmatprep.subr.bf16.mxu0 %v4990_v18  ;;  %v4578_v37 = vpack.c.bf16 %v5955_v51, %v5954_v50 }
 0x52e   :  { %4555 = vmatpush3.bf16.msra.mxu0 %v5328_v49  ;;  %4138 = vmatprep.mubr.msk.f32.mxu0 %vm4989_vm0, %v4988_v0 }
 0x52f   :  { %4556 = vmatprep.subr.bf16.mxu0 %v4990_v18 }
 0x532   :  { %4558 = vmatpush3.bf16.msra.mxu0 %v5339_v54 }
 0x533   :  { %4559 = vmatprep.subr.bf16.mxu0 %v4990_v18 }
 0x536   :  { %4561 = vmatpush3.bf16.msra.mxu0 %v5406_v47 }
 0x537   :  { %4562 = vmatprep.subr.bf16.mxu0 %v4990_v18 }
 0x53a   :  { %4564 = vmatpush3.bf16.msra.mxu0 %v5410_v2 }
 0x53b   :  { %4565 = vmatprep.subr.bf16.mxu0 %v4990_v18 }
 0x53e   :  { %4567 = vmatpush3.bf16.msra.mxu0 %v5414_v20 }
 0x53f   :  { %4568 = vmatprep.subr.bf16.mxu0 %v4990_v18 }
 0x542   :  { %4570 = vmatpush3.bf16.msra.mxu0 %v5430_v32 }
 0x543   :  { %4136 = vmatprep.subr.mxu0 %v4988_v0 }
 0x546   :  { %4137 = vmatpush3.msra.mxu0 %v5444_v39 }
 0x547   :  { %4139 = vmatmul.mubr.f32.vlgmr.msra.gmra.mrb[4].mxu0 %v5951_v46  ;;  %4571 = vmatprep.subr.bf16.mxu0 %v4990_v18  ;;  %v5963_v46 = vand.u32 4294901760, %v5534_v1 }
 0x548   :  { %4573 = vmatpush3.bf16.msra.mxu0 %v4572_v45  ;;  %4167 = vmatprep.mubr.msk.f32.mxu0 %vm4989_vm0, %v4988_v0  ;;  %v5962_v45 = vand.u32 4294901760, %v5532_v58  ;;  %v5965_v58 = vand.u32 4294901760, %v5544_v13 }
 0x549   :  { %4574 = vmatprep.subr.bf16.mxu0 %v4990_v18 }
 0x54a   :  { %v5772_v48 = vpack.c.bf16 %v5963_v46, %v5962_v45 }
 0x54c   :  { %4576 = vmatpush3.bf16.msra.mxu0 %v4575_v15 }
 0x54d   :  { %4577 = vmatprep.subr.bf16.mxu0 %v4990_v18 }
 0x550   :  { %4579 = vmatpush3.bf16.msra.mxu0 %v4578_v37  ;;  %v5964_v37 = vand.u32 4294901760, %v5542_v9 }
 0x551   :  { %4580 = vmatprep.subr.bf16.mxu0 %v4990_v18 }
 0x552   :  { %v5782_v21 = vpack.c.bf16 %v5965_v58, %v5964_v37 }
 0x554   :  { %4582 = vmatpush3.bf16.msra.mxu0 %v4581_v53 }
 0x555   :  { %4583 = vmatprep.subr.bf16.mxu0 %v4990_v18 }
 0x558   :  { %4585 = vmatpush3.bf16.msra.mxu0 %v4584_v61 }
 0x559   :  { %4586 = vmatprep.subr.bf16.mxu0 %v4990_v18 }
 0x55c   :  { %4588 = vmatpush3.bf16.msra.mxu0 %v4587_v6 }
 0x55d   :  { %4165 = vmatprep.subr.mxu0 %v4988_v0 }
 0x560   :  { %4166 = vmatpush3.msra.mxu0 %v2373_v24 }
 0x561   :  { %4168 = vmatmul.mubr.f32.vlgmr.msra.gmra.mrb[4].mxu0 %v5520_v10  ;;  %4589 = vmatprep.subr.bf16.mxu0 %v4990_v18 }
 0x562   :  { %4591 = vmatpush3.bf16.msra.mxu0 %v5328_v49  ;;  %4196 = vmatprep.mubr.msk.f32.mxu0 %vm4989_vm0, %v4988_v0  ;;  %v2814_v49 = vld [vmem:[#allocation13 + $0x60] sm:$0xf] }
 0x563   :  { %4592 = vmatprep.subr.bf16.mxu0 %v4990_v18  ;;  %v2826_v27 = vsel %vm2194_vm7, %v2814_v49, 0 }
 0x564   :  { %v5745_v3 = vand.u32 4294901760, %v2826_v27 }
 0x566   :  { %4594 = vmatpush3.bf16.msra.mxu0 %v5339_v54  ;;  %v2810_v54 = vld [vmem:[#allocation13 + $0x40] sm:$0xff]  ;;  %v5760_v19 = vsub.f32 %v2826_v27, %v5745_v3  ;;  %v4647_v27 = vpack.c.bf16 %v5556_v38, %v5551_v16 }
 0x567   :  { %4595 = vmatprep.subr.bf16.mxu0 %v4990_v18 }
 0x568   :  { %v3003_v51 = vand.u32 4294901760, %v5760_v19 }
 0x56a   :  { %4597 = vmatpush3.bf16.msra.mxu0 %v5406_v47  ;;  %v2811_v47 = vld [vmem:[#allocation13 + $0x48] sm:$0xff]  ;;  %v3004_v1 = vsub.f32 %v5760_v19, %v3003_v51 }
 0x56b   :  { %4598 = vmatprep.subr.bf16.mxu0 %v4990_v18 }
 0x56c   :  { %v3005_v52 = vand.u32 4294901760, %v3004_v1 }
 0x56e   :  { %4600 = vmatpush3.bf16.msra.mxu0 %v5410_v2  ;;  %v2853_v2 = vand.u32 4294901760, %v2810_v54 }
 0x56f   :  { %4601 = vmatprep.subr.bf16.mxu0 %v4990_v18 }
 0x570   :  { %v5739_v28 = vsub.f32 %v2810_v54, %v2853_v2 }
 0x572   :  { %4603 = vmatpush3.bf16.msra.mxu0 %v5414_v20  ;;  %v2856_v20 = vand.u32 4294901760, %v2811_v47  ;;  %v2975_v33 = vand.u32 4294901760, %v5739_v28 }
 0x573   :  { %4604 = vmatprep.subr.bf16.mxu0 %v4990_v18 }
 0x574   :  { %v5741_v30 = vsub.f32 %v2811_v47, %v2856_v20  ;;  %v2976_v24 = vsub.f32 %v5739_v28, %v2975_v33  ;;  %v5790_v53 = vpack.c.bf16 %v2856_v20, %v2853_v2  ;;  %v4644_v47 = vpack.c.bf16 %v5549_v17, %v5547_v59 }
 0x576   :  { %4606 = vmatpush3.bf16.msra.mxu0 %v5430_v32  ;;  %v2813_v32 = vld [vmem:[#allocation13 + $0x58] sm:$0xff]  ;;  %v2982_v34 = vand.u32 4294901760, %v5741_v30  ;;  %v2977_v35 = vand.u32 4294901760, %v2976_v24  ;;  %v4656_v13 = vpack.c.bf16 %v5741_v30, %v5739_v28  ;;  %v4653_v24 = vpack.c.bf16 %v5594_v44, %v5579_v5 }
 0x577   :  { %4194 = vmatprep.subr.mxu0 %v4988_v0 }
 0x578   :  { %v2983_v8 = vsub.f32 %v5741_v30, %v2982_v34 }
 0x57a   :  { %4195 = vmatpush3.msra.mxu0 %v5444_v39  ;;  %v2859_v39 = vand.u32 4294901760, %v2812_v31  ;;  %v2984_v43 = vand.u32 4294901760, %v2983_v8  ;;  %v5966_v8 = vand.u32 4294901760, %v5547_v59  ;;  %v4692_v59 = vpack.c.bf16 %v2982_v34, %v2975_v33 }
 0x57b   :  { %4197 = vmatmul.mubr.f32.vlgmr.msra.gmra.mrb[4].mxu0 %v5520_v10  ;;  %4607 = vmatprep.subr.bf16.mxu0 %v4990_v18  ;;  %v2862_v10 = vand.u32 4294901760, %v2813_v32 }
 0x57c   :  { %4609 = vmatpush3.bf16.msra.mxu0 %v5553_v11  ;;  %4225 = vmatprep.mubr.msk.f32.mxu0 %vm4989_vm0, %v4988_v0  ;;  %v5753_v12 = vsub.f32 %v2812_v31, %v2859_v39  ;;  %v4638_v29 = vpack.c.bf16 %v2984_v43, %v2977_v35  ;;  %v5967_v35 = vand.u32 4294901760, %v5549_v17  ;;  %v4686_v17 = vpack.c.bf16 %v2954_v7, %v2947_v4 }
 0x57d   :  { %4610 = vmatprep.subr.bf16.mxu0 %v4990_v18  ;;  %v5755_v57 = vsub.f32 %v2813_v32, %v2862_v10  ;;  %v5795_v9 = vpack.c.bf16 %v2862_v10, %v2859_v39  ;;  %v4650_v39 = vpack.c.bf16 %v5566_v63, %v5561_v62  ;;  %v3454_v62 = vld [vmem:[%s5925_s12] ss:$0 sm:$0xff] }
 0x57e   :  { %v2989_v42 = vand.u32 4294901760, %v5753_v12  ;;  %4639 = vmatpush3.bf16.msra.mxu1 %v4638_v29  ;;  %v4680_v43 = vpack.c.bf16 %v5967_v35, %v5966_v8  ;;  %v5968_v29 = vand.u32 4294901760, %v5551_v16  ;;  %v4689_v16 = vpack.c.bf16 %v2968_v36, %v2961_v23 }
 0x57f   :  { %v2996_v56 = vand.u32 4294901760, %v5755_v57  ;;  %4640 = vmatprep.subr.bf16.mxu1 %v4990_v18  ;;  %v4659_v22 = vpack.c.bf16 %v5755_v57, %v5753_v12 }
 0x580   :  { %4612 = vmatpush3.bf16.msra.mxu0 %v5610_v55  ;;  %v2990_v40 = vsub.f32 %v5753_v12, %v2989_v42 }
 0x581   :  { %4613 = vmatprep.subr.bf16.mxu0 %v4990_v18  ;;  %v2997_v41 = vsub.f32 %v5755_v57, %v2996_v56  ;;  %v4695_v7 = vpack.c.bf16 %v2996_v56, %v2989_v42 }
 0x582   :  { %v2991_v14 = vand.u32 4294901760, %v2990_v40  ;;  %v5969_v40 = vand.u32 4294901760, %v5556_v38 }
 0x583   :  { %v2998_v15 = vand.u32 4294901760, %v2997_v41 }
 0x584   :  { %4615 = vmatpush3.bf16.msra.mxu0 %v5772_v48  ;;  %v4683_v41 = vpack.c.bf16 %v5969_v40, %v5968_v29 }
 0x585   :  { %4616 = vmatprep.subr.bf16.mxu0 %v4990_v18  ;;  %v4641_v50 = vpack.c.bf16 %v2998_v15, %v2991_v14 }
 0x587   :  { %4642 = vmatpush3.bf16.msra.mxu1 %v4641_v50 }
 0x588   :  { %4618 = vmatpush3.bf16.msra.mxu0 %v5782_v21  ;;  %4252 = vmatprep.subr.mxu1 %v4988_v0 }
 0x589   :  { %4619 = vmatprep.subr.bf16.mxu0 %v4990_v18 }
 0x58b   :  { %4253 = vmatpush3.msra.mxu1 %v3005_v52 }
 0x58c   :  { %4621 = vmatpush3.bf16.msra.mxu0 %v5790_v53  ;;  %4643 = vmatprep.subr.bf16.mxu1 %v4990_v18 }
 0x58d   :  { %4622 = vmatprep.subr.bf16.mxu0 %v4990_v18 }
 0x590   :  { %4624 = vmatpush3.bf16.msra.mxu0 %v5795_v9 }
 0x591   :  { %4223 = vmatprep.subr.mxu0 %v4988_v0 }
 0x594   :  { %4224 = vmatpush3.msra.mxu0 %v5745_v3 }
 0x64e   :  { %v2796_v61 = vpop.f32.mrb[4].mxu0 }
 0x64f   :  { %v4719_v25 = vadd.f32 %v3453_v60, %v2796_v61  ;;  %v4198_v26 = vpop.f32.mrb[5].mxu0 }
 0x651   :  { %v2800_v6 = vmul.f32 0.5, %v4719_v25 }
 0x653   :  { %v2801_v49 = vmax.f32 %v4719_v25, %v2800_v6 }
 0x655   :  { %v2823_v54 = vsel %vm2190_vm8, %v2801_v49, 0 }
 0x656   :  { %v5810_v2 = vand.u32 4294901760, %v2823_v54 }
 0x658   :  { %v2907_v20 = vsub.f32 %v2823_v54, %v5810_v2  ;;  %4255 = vmatmul.mubr.f32.vlgmr.msra.gmra.mrb[4].mxu1 %v5810_v2 }
 0x659   :  { %4645 = vmatpush3.bf16.msra.mxu1 %v4644_v47  ;;  %4283 = vmatprep.mubr.msk.f32.mxu1 %vm4989_vm0, %v4988_v0 }
 0x65a   :  { %4646 = vmatprep.subr.bf16.mxu1 %v4990_v18  ;;  %v2908_v31 = vand.u32 4294901760, %v2907_v20 }
 0x65c   :  { %v2909_v32 = vsub.f32 %v2907_v20, %v2908_v31 }
 0x65d   :  { %4648 = vmatpush3.bf16.msra.mxu1 %v4647_v27 }
 0x65e   :  { %4649 = vmatprep.subr.bf16.mxu1 %v4990_v18  ;;  %v2910_v10 = vand.u32 4294901760, %v2909_v32 }
 0x660   :  { %4226 = vmatmul.mubr.f32.vlgmr.msra.gmra.mrb[6].mxu0 %v2910_v10 }
 0x661   :  { %4651 = vmatpush3.bf16.msra.mxu1 %v4650_v39 }
 0x662   :  { %4652 = vmatprep.subr.bf16.mxu1 %v4990_v18 }
 0x665   :  { %4654 = vmatpush3.bf16.msra.mxu1 %v4653_v24 }
 0x666   :  { %4655 = vmatprep.subr.bf16.mxu1 %v4990_v18 }
 0x669   :  { %4657 = vmatpush3.bf16.msra.mxu1 %v4656_v13 }
 0x66a   :  { %4658 = vmatprep.subr.bf16.mxu1 %v4990_v18 }
 0x66d   :  { %4660 = vmatpush3.bf16.msra.mxu1 %v4659_v22 }
 0x66e   :  { %4281 = vmatprep.subr.mxu1 %v4988_v0 }
 0x671   :  { %4282 = vmatpush3.msra.mxu1 %v5760_v19 }
 0x672   :  { %4284 = vmatmul.mubr.f32.vlgmr.msra.gmra.mrb[4].mxu1 %v2907_v20  ;;  %4661 = vmatprep.subr.bf16.mxu1 %v4990_v18 }
 0x673   :  { %4663 = vmatpush3.bf16.msra.mxu1 %v5553_v11  ;;  %4312 = vmatprep.mubr.msk.f32.mxu1 %vm4989_vm0, %v4988_v0 }
 0x674   :  { %4664 = vmatprep.subr.bf16.mxu1 %v4990_v18 }
 0x677   :  { %4666 = vmatpush3.bf16.msra.mxu1 %v5610_v55 }
 0x678   :  { %4667 = vmatprep.subr.bf16.mxu1 %v4990_v18 }
 0x67b   :  { %4669 = vmatpush3.bf16.msra.mxu1 %v5772_v48 }
 0x67c   :  { %4670 = vmatprep.subr.bf16.mxu1 %v4990_v18 }
 0x67f   :  { %4672 = vmatpush3.bf16.msra.mxu1 %v5782_v21 }
 0x680   :  { %4673 = vmatprep.subr.bf16.mxu1 %v4990_v18 }
 0x683   :  { %4675 = vmatpush3.bf16.msra.mxu1 %v5790_v53 }
 0x684   :  { %4676 = vmatprep.subr.bf16.mxu1 %v4990_v18 }
 0x687   :  { %4678 = vmatpush3.bf16.msra.mxu1 %v5795_v9 }
 0x688   :  { %4310 = vmatprep.subr.mxu1 %v4988_v0 }
 0x68b   :  { %4311 = vmatpush3.msra.mxu1 %v5745_v3 }
 0x68c   :  { %4313 = vmatmul.mubr.f32.vlgmr.msra.gmra.mrb[4].mxu1 %v2908_v31  ;;  %4679 = vmatprep.subr.bf16.mxu1 %v4990_v18 }
 0x68d   :  { %4681 = vmatpush3.bf16.msra.mxu1 %v4680_v43  ;;  %4341 = vmatprep.mubr.msk.f32.mxu1 %vm4989_vm0, %v4988_v0 }
 0x68e   :  { %4682 = vmatprep.subr.bf16.mxu1 %v4990_v18 }
 0x691   :  { %4684 = vmatpush3.bf16.msra.mxu1 %v4683_v41 }
 0x692   :  { %4685 = vmatprep.subr.bf16.mxu1 %v4990_v18 }
 0x695   :  { %4687 = vmatpush3.bf16.msra.mxu1 %v4686_v17 }
 0x696   :  { %4688 = vmatprep.subr.bf16.mxu1 %v4990_v18 }
 0x699   :  { %4690 = vmatpush3.bf16.msra.mxu1 %v4689_v16 }
 0x69a   :  { %4691 = vmatprep.subr.bf16.mxu1 %v4990_v18 }
 0x69d   :  { %4693 = vmatpush3.bf16.msra.mxu1 %v4692_v59 }
 0x69e   :  { %4694 = vmatprep.subr.bf16.mxu1 %v4990_v18 }
 0x6a1   :  { %4696 = vmatpush3.bf16.msra.mxu1 %v4695_v7 }
 0x6a2   :  { %4339 = vmatprep.subr.mxu1 %v4988_v0 }
 0x6a5   :  { %4340 = vmatpush3.msra.mxu1 %v3003_v51 }
 0x6a6   :  { %4342 = vmatmul.mubr.f32.vlgmr.msra.gmra.mrb[4].mxu1 %v5810_v2  ;;  %4697 = vmatprep.subr.bf16.mxu1 %v4990_v18 }
 0x6a7   :  { %4699 = vmatpush3.bf16.msra.mxu1 %v5553_v11  ;;  %4370 = vmatprep.mubr.msk.f32.mxu1 %vm4989_vm0, %v4988_v0 }
 0x6a8   :  { %4700 = vmatprep.subr.bf16.mxu1 %v4990_v18 }
 0x6ab   :  { %4702 = vmatpush3.bf16.msra.mxu1 %v5610_v55 }
 0x6ac   :  { %4703 = vmatprep.subr.bf16.mxu1 %v4990_v18 }
 0x6af   :  { %4705 = vmatpush3.bf16.msra.mxu1 %v5772_v48 }
 0x6b0   :  { %4706 = vmatprep.subr.bf16.mxu1 %v4990_v18 }
 0x6b3   :  { %4708 = vmatpush3.bf16.msra.mxu1 %v5782_v21 }
 0x6b4   :  { %4709 = vmatprep.subr.bf16.mxu1 %v4990_v18 }
 0x6b7   :  { %4711 = vmatpush3.bf16.msra.mxu1 %v5790_v53 }
 0x6b8   :  { %4712 = vmatprep.subr.bf16.mxu1 %v4990_v18 }
 0x6bb   :  { %4714 = vmatpush3.bf16.msra.mxu1 %v5795_v9 }
 0x6bc   :  { %4368 = vmatprep.subr.mxu1 %v4988_v0 }
 0x6bf   :  { %4369 = vmatpush3.msra.mxu1 %v5745_v3 }
 0x6c0   :  { %4371 = vmatmul.mubr.f32.vlgmr.msra.gmra.mrb[4].mxu1 %v5810_v2 }
 0x733   :  { %v2912_v36 = vpop.f32.mrb[6].mxu0 }
 0x734   :  { %v4227_v44 = vpop.f32.mrb[7].mxu0  ;;  %v2913_v11 = vadd.f32 %v3454_v62, %v2912_v36 }
 0x793   :  { %v3426_v55 = vpop.f32.mrb[4].mxu1 }
 0x794   :  { %v4721_v4 = vadd.f32 %v3426_v55, %v2913_v11  ;;  %v4372_v18 = vpop.f32.mrb[5].mxu1 }
 0x796   :  { %3430 = vst [vmem:[#allocation14] sm:$0xff] %v4721_v4 }
 0x797   :  { %4958 = shalt.err (!%p4955_p4)
}
 0x798   :  { %s4959_s1 = scalar_lea.hbm %s5926_s13, 128 }
 0x799   :  { %p4960_p5 = scmp.ne.s32.totalorder %s5926_s13, %s4959_s1  ;;  %p4963_p6 = scmp.lt.u32.totalorder %s4959_s1, %s5926_s13 }
 0x79b   :  { %p4965_p7 = pnand %p4963_p6, %p4960_p5 }
 0x79d   :  { %4968 = shalt.err (!%p4965_p7)
}
 0x79e   :  { %3440 = dma.vmem_to_hbm [thread:$0]  %s3438_s27, 128, %s5926_s13, [#allocation4]  }
 0x79f   :  { %4977 = dma.done.wait [#allocation4], 128  }
 0x7a0   :  { %4978 = vsyncadd [#allocation4], 4294967168 }
 0x7a1   :  { %3444 = vsyncpa [#allocation3], 1 }
 0x7a2   :  { %3445 = vsyncpa [#allocation6], 1 }
 0x7a3   :  { %3446 = vsyncpa [#allocation9], 1 }
 0x7a4   :  { %3447 = vsyncpa [#allocation12], 1 }
 0x7a5   :  { %3448 = vsyncpa [#allocation4], 1 }

</bundles_post_ra>
